<compile_context>
chip_gen: v6e
topology: v6e:2x2x1
jax: 0.10.0
libtpu: 0.0.40
codegen_flags: <defaults>
</compile_context>

<pallas_src>
import jax
import jax.numpy as jnp
from jax import lax
from jax.experimental import pallas as pl
from jax.experimental.pallas import tpu as pltpu


# ------------------------- fused LSTM + head kernel --------------------------
def _make_fused_lstm_kernel(n_layers, seq_len, batch, hidden):
    """Builds kernel: x2d, (W_ih^T, W_hh^T, b)*n_layers, w1_t, b1, w2_pad, b2_pad -> out_pad."""
    S, B, H = seq_len, batch, hidden

    def kernel(*refs):
        x2d_ref = refs[0]
        lstm_refs = refs[1:1 + 3 * n_layers]
        w1_ref, b1_ref, w2_ref, b2_ref, out_ref = refs[1 + 3 * n_layers:]

        # ---- hoisted weight / bias loads (once, not per step) ----
        wih = [lstm_refs[3 * l][...] for l in range(n_layers)]        # (I_l, 4H)
        whh = [lstm_refs[3 * l + 1][...] for l in range(n_layers)]    # (H,   4H)
        bb = [lstm_refs[3 * l + 2][...] for l in range(n_layers)]     # (1,   4H)
        # pre-broadcast the per-step biases of layers > 0 (JAX doesn't CSE
        # broadcast_in_dim; do it once outside the time loop)
        bb_b = [jnp.broadcast_to(bb[l], (B, 4 * H)) for l in range(n_layers)]

        # ---- single-tanh gate constants (i|f|g|o lane layout), hoisted ----
        lane = lax.broadcasted_iota(jnp.int32, (1, 4 * H), 1)
        is_g = jnp.logical_and(lane >= 2 * H, lane < 3 * H)
        pre = jnp.where(is_g, 1.0, 0.5).astype(jnp.float32)    # tanh pre-scale
        post_a = jnp.broadcast_to(pre, (B, 4 * H))              # post multiply
        post_c = jnp.broadcast_to(
            jnp.where(is_g, 0.0, 0.5).astype(jnp.float32), (B, 4 * H))
        pre_b = jnp.broadcast_to(pre, (B, 4 * H))

        def lstm_cell(gates, c_prev):
            # sigmoid(x) = 0.5*(1 + tanh(x/2)) on i/f/o lanes, plain tanh on g
            t = jnp.tanh(gates * pre_b)          # ONE full-width EUP pass
            f = t * post_a + post_c              # VALU fixup (slack slots)
            i_g = f[:, 0 * H:1 * H]
            f_g = f[:, 1 * H:2 * H]
            g_g = f[:, 2 * H:3 * H]
            o_g = f[:, 3 * H:4 * H]
            c_new = f_g * c_prev + i_g * g_g
            h_new = o_g * jnp.tanh(c_new)
            return h_new, c_new

        # ---- layer-0 input projection: one batched matmul over all steps ----
        gx0 = jnp.dot(x2d_ref[...], wih[0],
                      preferred_element_type=jnp.float32) + bb[0]   # (S*B, 4H)

        # ---- wavefront over (layer, time) diagonals ----
        # At wave w, layer l executes step t = w - l.  Layers are emitted in
        # DECREASING order within a wave so layer l reads h[l-1] from the
        # previous wave (i.e. layer l-1's step t), before it is overwritten.
        # TODO(synk): if B or S grows, move this to lax.fori_loop(unroll=True)
        #             with VMEM scratch to bound vreg live ranges.
        h = [jnp.zeros((B, H), jnp.float32) for _ in range(n_layers)]
        c = [jnp.zeros((B, H), jnp.float32) for _ in range(n_layers)]
        for w in range(S + n_layers - 1):
            for l in range(n_layers - 1, -1, -1):
                t = w - l
                if 0 <= t < S:
                    if l == 0:
                        gates = gx0[t * B:(t + 1) * B, :] + jnp.dot(
                            h[0], whh[0], preferred_element_type=jnp.float32)
                    else:
                        # input projection (off layer-l's serial chain) + recurrence
                        gates = (jnp.dot(h[l - 1], wih[l],
                                         preferred_element_type=jnp.float32)
                                 + bb_b[l]
                                 + jnp.dot(h[l], whh[l],
                                           preferred_element_type=jnp.float32))
                    h[l], c[l] = lstm_cell(gates, c[l])

        # ---- MLP head on hn[-1]: fc(relu(fc_1(relu(hn[-1])))) ----
        hr = jnp.maximum(h[-1], 0.0)
        z = jnp.dot(hr, w1_ref[...], preferred_element_type=jnp.float32) + b1_ref[...]
        z = jnp.maximum(z, 0.0)
        out = jnp.dot(z, w2_ref[...], preferred_element_type=jnp.float32) + b2_ref[...]
        out_ref[...] = out.astype(out_ref.dtype)     # lane-dense (B, 128) store

    return kernel


# --------------------------------- full model --------------------------------
def lstm_model_forward(x, x_mark, params):
    # t_embed is None -> x_mark is unused (matches the reference forward).
    # TODO(synk): Time2Vec branches (t_embed='time2vec_app'/'time2vec_add') and
    #             training-mode inter-layer dropout are not exercised here.
    del x_mark
    B, S, I = x.shape
    n_layers = len(params["lstm"])
    H = params["lstm"][0][1].shape[0]
    d_ff = params["w1_t"].shape[1]
    c_out = params["w2_t"].shape[1]
    OUT_PAD = 128

    # Lane-dense head output: pad the final linear to 128 output lanes.
    w2_pad = jnp.zeros((d_ff, OUT_PAD), jnp.float32).at[:, :c_out].set(params["w2_t"])
    b2_pad = jnp.zeros((1, OUT_PAD), jnp.float32).at[:, :c_out].set(params["b2"])

    # Time-major 2-D slab (S*B, I): tiny wrapper-side shuffle, lane-dense inside.
    x2d = jnp.transpose(x, (1, 0, 2)).reshape(S * B, I).astype(jnp.float32)

    args = [x2d]
    for (w_ih_t, w_hh_t, b_row) in params["lstm"]:
        args += [w_ih_t, w_hh_t, b_row]
    args += [params["w1_t"], params["b1"], w2_pad, b2_pad]

    vmem = lambda: pl.BlockSpec(memory_space=pltpu.MemorySpace.VMEM)
    out = pl.pallas_call(
        _make_fused_lstm_kernel(n_layers, S, B, H),
        out_shape=jax.ShapeDtypeStruct((B, OUT_PAD), jnp.float32),
        in_specs=[vmem() for _ in args],
        out_specs=vmem(),
    )(*args)
    return out[:, :c_out][:, None, :].astype(x.dtype)   # (B, pred_len=1, c_out)


# ------------------------------ pure-JAX reference ----------------------------
def lstm_model_ref(x, params):
    B, S, _ = x.shape
    seq = x
    for (w_ih_t, w_hh_t, b_row) in params["lstm"]:
        H = w_hh_t.shape[0]
        h = jnp.zeros((B, H), jnp.float32)
        c = jnp.zeros((B, H), jnp.float32)
        outs = []
        for t in range(S):
            gates = seq[:, t, :] @ w_ih_t + h @ w_hh_t + b_row
            i_g = jax.nn.sigmoid(gates[:, 0 * H:1 * H])
            f_g = jax.nn.sigmoid(gates[:, 1 * H:2 * H])
            g_g = jnp.tanh(gates[:, 2 * H:3 * H])
            o_g = jax.nn.sigmoid(gates[:, 3 * H:4 * H])
            c = f_g * c + i_g * g_g
            h = o_g * jnp.tanh(c)
            outs.append(h)
        seq = jnp.stack(outs, axis=1)
    hn_last = seq[:, -1, :]
    z = jnp.maximum(jnp.maximum(hn_last, 0.0) @ params["w1_t"] + params["b1"], 0.0)
    out = z @ params["w2_t"] + params["b2"]
    return out[:, None, :]


# ----------------------------------- main -------------------------------------
if __name__ == "__main__":
    # Small config
    B, S = 2, 8
    enc_in, d_model, e_layers, d_ff, c_out = 4, 32, 2, 64, 4

    key = jax.random.PRNGKey(0)

    def uniform(k, shape, scale):
        return jax.random.uniform(k, shape, jnp.float32, -scale, scale)

    # Deterministic parameter init (mimics PyTorch's U(-1/sqrt(H), 1/sqrt(H))).
    params = {"lstm": []}
    scale = 1.0 / jnp.sqrt(float(d_model))
    for layer in range(e_layers):
        in_sz = enc_in if layer == 0 else d_model
        key, k1, k2, k3 = jax.random.split(key, 4)
        w_ih_t = uniform(k1, (in_sz, 4 * d_model), scale)     # (I, 4H) == W_ih^T
        w_hh_t = uniform(k2, (d_model, 4 * d_model), scale)   # (H, 4H) == W_hh^T
        b_row = uniform(k3, (1, 4 * d_model), scale)          # b_ih + b_hh combined
        params["lstm"].append((w_ih_t, w_hh_t, b_row))

    key, k1, k2, k3, k4 = jax.random.split(key, 5)
    params["w1_t"] = uniform(k1, (d_model, d_ff), 1.0 / jnp.sqrt(float(d_model)))
    params["b1"] = uniform(k2, (1, d_ff), 1.0 / jnp.sqrt(float(d_model)))
    params["w2_t"] = uniform(k3, (d_ff, c_out), 1.0 / jnp.sqrt(float(d_ff)))
    params["b2"] = uniform(k4, (1, c_out), 1.0 / jnp.sqrt(float(d_ff)))

    # Inputs (batch_first, like the PyTorch module)
    key, kx, km = jax.random.split(key, 3)
    x = jax.random.normal(kx, (B, S, enc_in), jnp.float32)
    x_mark = jax.random.normal(km, (B, S, 4), jnp.float32)    # unused (t_embed=None)

    out = lstm_model_forward(x, x_mark, params)
    out = jax.block_until_ready(out)
    assert out.shape == (B, 1, c_out), out.shape

    ref = lstm_model_ref(x, params)
    assert jnp.allclose(out, ref, atol=1e-4, rtol=1e-4), (
        "mismatch", float(jnp.max(jnp.abs(out - ref))))

    print("KERNEL_OK")
</pallas_src>

<mosaic_0001>
module attributes {stable_mosaic.version = 11 : i64} {
  func.func @kernel(%arg0: memref<16x4xf32, #tpu.memory_space<vmem>>, %arg1: memref<4x128xf32, #tpu.memory_space<vmem>>, %arg2: memref<32x128xf32, #tpu.memory_space<vmem>>, %arg3: memref<1x128xf32, #tpu.memory_space<vmem>>, %arg4: memref<32x128xf32, #tpu.memory_space<vmem>>, %arg5: memref<32x128xf32, #tpu.memory_space<vmem>>, %arg6: memref<1x128xf32, #tpu.memory_space<vmem>>, %arg7: memref<32x64xf32, #tpu.memory_space<vmem>>, %arg8: memref<1x64xf32, #tpu.memory_space<vmem>>, %arg9: memref<64x128xf32, #tpu.memory_space<vmem>>, %arg10: memref<1x128xf32, #tpu.memory_space<vmem>>, %arg11: memref<2x128xf32, #tpu.memory_space<vmem>>) attributes {dimension_semantics = [], scalar_prefetch = 0 : i64, scratch_operands = 0 : i64, tpu.core_type = #tpu.core_type<tc>} {
    %c0 = arith.constant 0 : index
    %c0_0 = arith.constant 0 : index
    %0 = vector.load %arg1[%c0, %c0_0] : memref<4x128xf32, #tpu.memory_space<vmem>>, vector<4x128xf32>
    %c0_1 = arith.constant 0 : index
    %c0_2 = arith.constant 0 : index
    %1 = vector.load %arg4[%c0_1, %c0_2] : memref<32x128xf32, #tpu.memory_space<vmem>>, vector<32x128xf32>
    %c0_3 = arith.constant 0 : index
    %c0_4 = arith.constant 0 : index
    %2 = vector.load %arg2[%c0_3, %c0_4] : memref<32x128xf32, #tpu.memory_space<vmem>>, vector<32x128xf32>
    %c0_5 = arith.constant 0 : index
    %c0_6 = arith.constant 0 : index
    %3 = vector.load %arg5[%c0_5, %c0_6] : memref<32x128xf32, #tpu.memory_space<vmem>>, vector<32x128xf32>
    %c0_7 = arith.constant 0 : index
    %c0_8 = arith.constant 0 : index
    %4 = vector.load %arg3[%c0_7, %c0_8] : memref<1x128xf32, #tpu.memory_space<vmem>>, vector<1x128xf32>
    %c0_9 = arith.constant 0 : index
    %c0_10 = arith.constant 0 : index
    %5 = vector.load %arg6[%c0_9, %c0_10] : memref<1x128xf32, #tpu.memory_space<vmem>>, vector<1x128xf32>
    %6 = vector.shape_cast %5 : vector<1x128xf32> to vector<1x128xf32>
    %7 = vector.broadcast %6 : vector<1x128xf32> to vector<2x128xf32>
    %8 = tpu.iota {dimensions = array<i32: 1>} : vector<1x128xi32>
    %c64_i32 = arith.constant 64 : i32
    %9 = vector.broadcast %c64_i32 : i32 to vector<1x128xi32>
    %10 = arith.cmpi sge, %8, %9 : vector<1x128xi32>
    %c96_i32 = arith.constant 96 : i32
    %11 = vector.broadcast %c96_i32 : i32 to vector<1x128xi32>
    %12 = arith.cmpi slt, %8, %11 : vector<1x128xi32>
    %13 = arith.andi %10, %12 : vector<1x128xi1>
    %cst = arith.constant 1.000000e+00 : f32
    %cst_11 = arith.constant 5.000000e-01 : f32
    %14 = vector.broadcast %cst : f32 to vector<1x128xf32>
    %15 = vector.broadcast %cst_11 : f32 to vector<1x128xf32>
    %16 = arith.select %13, %14, %15 : vector<1x128xi1>, vector<1x128xf32>
    %17 = vector.shape_cast %16 : vector<1x128xf32> to vector<1x128xf32>
    %18 = vector.broadcast %17 : vector<1x128xf32> to vector<2x128xf32>
    %cst_12 = arith.constant 0.000000e+00 : f32
    %cst_13 = arith.constant 5.000000e-01 : f32
    %19 = vector.broadcast %cst_12 : f32 to vector<1x128xf32>
    %20 = vector.broadcast %cst_13 : f32 to vector<1x128xf32>
    %21 = arith.select %13, %19, %20 : vector<1x128xi1>, vector<1x128xf32>
    %22 = vector.shape_cast %21 : vector<1x128xf32> to vector<1x128xf32>
    %23 = vector.broadcast %22 : vector<1x128xf32> to vector<2x128xf32>
    %24 = vector.shape_cast %16 : vector<1x128xf32> to vector<1x128xf32>
    %25 = vector.broadcast %24 : vector<1x128xf32> to vector<2x128xf32>
    %c0_14 = arith.constant 0 : index
    %c0_15 = arith.constant 0 : index
    %26 = vector.load %arg0[%c0_14, %c0_15] : memref<16x4xf32, #tpu.memory_space<vmem>>, vector<16x4xf32>
    %cst_16 = arith.constant dense<0.000000e+00> : vector<16x128xf32>
    %27 = tpu.matmul %26, %0, %cst_16 {dimension_numbers = #tpu.dot_dimension_numbers<[1], [0], [0], [1], [0, 0, 1, 1], [], []>} : vector<16x4xf32>, vector<4x128xf32>, vector<16x128xf32> -> vector<16x128xf32>
    %28 = vector.broadcast %4 : vector<1x128xf32> to vector<16x128xf32>
    %29 = arith.addf %27, %28 : vector<16x128xf32>
    %cst_17 = arith.constant 0.000000e+00 : f32
    %30 = vector.broadcast %cst_17 : f32 to vector<2x32xf32>
    %cst_18 = arith.constant 0.000000e+00 : f32
    %31 = vector.broadcast %cst_18 : f32 to vector<2x32xf32>
    %cst_19 = arith.constant 0.000000e+00 : f32
    %32 = vector.broadcast %cst_19 : f32 to vector<2x32xf32>
    %cst_20 = arith.constant 0.000000e+00 : f32
    %33 = vector.broadcast %cst_20 : f32 to vector<2x32xf32>
    %34 = vector.extract_strided_slice %29 {offsets = [0, 0], sizes = [2, 128], strides = [1, 1]} : vector<16x128xf32> to vector<2x128xf32>
    %cst_21 = arith.constant dense<0.000000e+00> : vector<2x128xf32>
    %35 = tpu.matmul %30, %2, %cst_21 {dimension_numbers = #tpu.dot_dimension_numbers<[1], [0], [0], [1], [0, 0, 1, 1], [], []>} : vector<2x32xf32>, vector<32x128xf32>, vector<2x128xf32> -> vector<2x128xf32>
    %36 = arith.addf %34, %35 : vector<2x128xf32>
    %37 = arith.mulf %36, %25 : vector<2x128xf32>
    %38 = math.tanh %37 : vector<2x128xf32>
    %39 = arith.mulf %38, %18 : vector<2x128xf32>
    %40 = arith.addf %39, %23 : vector<2x128xf32>
    %41 = vector.extract_strided_slice %40 {offsets = [0, 0], sizes = [2, 32], strides = [1, 1]} : vector<2x128xf32> to vector<2x32xf32>
    %42 = vector.extract_strided_slice %40 {offsets = [0, 32], sizes = [2, 32], strides = [1, 1]} : vector<2x128xf32> to vector<2x32xf32>
    %43 = vector.extract_strided_slice %40 {offsets = [0, 64], sizes = [2, 32], strides = [1, 1]} : vector<2x128xf32> to vector<2x32xf32>
    %44 = vector.extract_strided_slice %40 {offsets = [0, 96], sizes = [2, 32], strides = [1, 1]} : vector<2x128xf32> to vector<2x32xf32>
    %45 = arith.mulf %42, %32 : vector<2x32xf32>
    %46 = arith.mulf %41, %43 : vector<2x32xf32>
    %47 = arith.addf %45, %46 : vector<2x32xf32>
    %48 = math.tanh %47 : vector<2x32xf32>
    %49 = arith.mulf %44, %48 : vector<2x32xf32>
    %cst_22 = arith.constant dense<0.000000e+00> : vector<2x128xf32>
    %50 = tpu.matmul %49, %1, %cst_22 {dimension_numbers = #tpu.dot_dimension_numbers<[1], [0], [0], [1], [0, 0, 1, 1], [], []>} : vector<2x32xf32>, vector<32x128xf32>, vector<2x128xf32> -> vector<2x128xf32>
    %51 = arith.addf %50, %7 : vector<2x128xf32>
    %cst_23 = arith.constant dense<0.000000e+00> : vector<2x128xf32>
    %52 = tpu.matmul %31, %3, %cst_23 {dimension_numbers = #tpu.dot_dimension_numbers<[1], [0], [0], [1], [0, 0, 1, 1], [], []>} : vector<2x32xf32>, vector<32x128xf32>, vector<2x128xf32> -> vector<2x128xf32>
    %53 = arith.addf %51, %52 : vector<2x128xf32>
    %54 = arith.mulf %53, %25 : vector<2x128xf32>
    %55 = math.tanh %54 : vector<2x128xf32>
    %56 = arith.mulf %55, %18 : vector<2x128xf32>
    %57 = arith.addf %56, %23 : vector<2x128xf32>
    %58 = vector.extract_strided_slice %57 {offsets = [0, 0], sizes = [2, 32], strides = [1, 1]} : vector<2x128xf32> to vector<2x32xf32>
    %59 = vector.extract_strided_slice %57 {offsets = [0, 32], sizes = [2, 32], strides = [1, 1]} : vector<2x128xf32> to vector<2x32xf32>
    %60 = vector.extract_strided_slice %57 {offsets = [0, 64], sizes = [2, 32], strides = [1, 1]} : vector<2x128xf32> to vector<2x32xf32>
    %61 = vector.extract_strided_slice %57 {offsets = [0, 96], sizes = [2, 32], strides = [1, 1]} : vector<2x128xf32> to vector<2x32xf32>
    %62 = arith.mulf %59, %33 : vector<2x32xf32>
    %63 = arith.mulf %58, %60 : vector<2x32xf32>
    %64 = arith.addf %62, %63 : vector<2x32xf32>
    %65 = math.tanh %64 : vector<2x32xf32>
    %66 = arith.mulf %61, %65 : vector<2x32xf32>
    %67 = vector.extract_strided_slice %29 {offsets = [2, 0], sizes = [2, 128], strides = [1, 1]} : vector<16x128xf32> to vector<2x128xf32>
    %cst_24 = arith.constant dense<0.000000e+00> : vector<2x128xf32>
    %68 = tpu.matmul %49, %2, %cst_24 {dimension_numbers = #tpu.dot_dimension_numbers<[1], [0], [0], [1], [0, 0, 1, 1], [], []>} : vector<2x32xf32>, vector<32x128xf32>, vector<2x128xf32> -> vector<2x128xf32>
    %69 = arith.addf %67, %68 : vector<2x128xf32>
    %70 = arith.mulf %69, %25 : vector<2x128xf32>
    %71 = math.tanh %70 : vector<2x128xf32>
    %72 = arith.mulf %71, %18 : vector<2x128xf32>
    %73 = arith.addf %72, %23 : vector<2x128xf32>
    %74 = vector.extract_strided_slice %73 {offsets = [0, 0], sizes = [2, 32], strides = [1, 1]} : vector<2x128xf32> to vector<2x32xf32>
    %75 = vector.extract_strided_slice %73 {offsets = [0, 32], sizes = [2, 32], strides = [1, 1]} : vector<2x128xf32> to vector<2x32xf32>
    %76 = vector.extract_strided_slice %73 {offsets = [0, 64], sizes = [2, 32], strides = [1, 1]} : vector<2x128xf32> to vector<2x32xf32>
    %77 = vector.extract_strided_slice %73 {offsets = [0, 96], sizes = [2, 32], strides = [1, 1]} : vector<2x128xf32> to vector<2x32xf32>
    %78 = arith.mulf %75, %47 : vector<2x32xf32>
    %79 = arith.mulf %74, %76 : vector<2x32xf32>
    %80 = arith.addf %78, %79 : vector<2x32xf32>
    %81 = math.tanh %80 : vector<2x32xf32>
    %82 = arith.mulf %77, %81 : vector<2x32xf32>
    %cst_25 = arith.constant dense<0.000000e+00> : vector<2x128xf32>
    %83 = tpu.matmul %82, %1, %cst_25 {dimension_numbers = #tpu.dot_dimension_numbers<[1], [0], [0], [1], [0, 0, 1, 1], [], []>} : vector<2x32xf32>, vector<32x128xf32>, vector<2x128xf32> -> vector<2x128xf32>
    %84 = arith.addf %83, %7 : vector<2x128xf32>
    %cst_26 = arith.constant dense<0.000000e+00> : vector<2x128xf32>
    %85 = tpu.matmul %66, %3, %cst_26 {dimension_numbers = #tpu.dot_dimension_numbers<[1], [0], [0], [1], [0, 0, 1, 1], [], []>} : vector<2x32xf32>, vector<32x128xf32>, vector<2x128xf32> -> vector<2x128xf32>
    %86 = arith.addf %84, %85 : vector<2x128xf32>
    %87 = arith.mulf %86, %25 : vector<2x128xf32>
    %88 = math.tanh %87 : vector<2x128xf32>
    %89 = arith.mulf %88, %18 : vector<2x128xf32>
    %90 = arith.addf %89, %23 : vector<2x128xf32>
    %91 = vector.extract_strided_slice %90 {offsets = [0, 0], sizes = [2, 32], strides = [1, 1]} : vector<2x128xf32> to vector<2x32xf32>
    %92 = vector.extract_strided_slice %90 {offsets = [0, 32], sizes = [2, 32], strides = [1, 1]} : vector<2x128xf32> to vector<2x32xf32>
    %93 = vector.extract_strided_slice %90 {offsets = [0, 64], sizes = [2, 32], strides = [1, 1]} : vector<2x128xf32> to vector<2x32xf32>
    %94 = vector.extract_strided_slice %90 {offsets = [0, 96], sizes = [2, 32], strides = [1, 1]} : vector<2x128xf32> to vector<2x32xf32>
    %95 = arith.mulf %92, %64 : vector<2x32xf32>
    %96 = arith.mulf %91, %93 : vector<2x32xf32>
    %97 = arith.addf %95, %96 : vector<2x32xf32>
    %98 = math.tanh %97 : vector<2x32xf32>
    %99 = arith.mulf %94, %98 : vector<2x32xf32>
    %100 = vector.extract_strided_slice %29 {offsets = [4, 0], sizes = [2, 128], strides = [1, 1]} : vector<16x128xf32> to vector<2x128xf32>
    %cst_27 = arith.constant dense<0.000000e+00> : vector<2x128xf32>
    %101 = tpu.matmul %82, %2, %cst_27 {dimension_numbers = #tpu.dot_dimension_numbers<[1], [0], [0], [1], [0, 0, 1, 1], [], []>} : vector<2x32xf32>, vector<32x128xf32>, vector<2x128xf32> -> vector<2x128xf32>
    %102 = arith.addf %100, %101 : vector<2x128xf32>
    %103 = arith.mulf %102, %25 : vector<2x128xf32>
    %104 = math.tanh %103 : vector<2x128xf32>
    %105 = arith.mulf %104, %18 : vector<2x128xf32>
    %106 = arith.addf %105, %23 : vector<2x128xf32>
    %107 = vector.extract_strided_slice %106 {offsets = [0, 0], sizes = [2, 32], strides = [1, 1]} : vector<2x128xf32> to vector<2x32xf32>
    %108 = vector.extract_strided_slice %106 {offsets = [0, 32], sizes = [2, 32], strides = [1, 1]} : vector<2x128xf32> to vector<2x32xf32>
    %109 = vector.extract_strided_slice %106 {offsets = [0, 64], sizes = [2, 32], strides = [1, 1]} : vector<2x128xf32> to vector<2x32xf32>
    %110 = vector.extract_strided_slice %106 {offsets = [0, 96], sizes = [2, 32], strides = [1, 1]} : vector<2x128xf32> to vector<2x32xf32>
    %111 = arith.mulf %108, %80 : vector<2x32xf32>
    %112 = arith.mulf %107, %109 : vector<2x32xf32>
    %113 = arith.addf %111, %112 : vector<2x32xf32>
    %114 = math.tanh %113 : vector<2x32xf32>
    %115 = arith.mulf %110, %114 : vector<2x32xf32>
    %cst_28 = arith.constant dense<0.000000e+00> : vector<2x128xf32>
    %116 = tpu.matmul %115, %1, %cst_28 {dimension_numbers = #tpu.dot_dimension_numbers<[1], [0], [0], [1], [0, 0, 1, 1], [], []>} : vector<2x32xf32>, vector<32x128xf32>, vector<2x128xf32> -> vector<2x128xf32>
    %117 = arith.addf %116, %7 : vector<2x128xf32>
    %cst_29 = arith.constant dense<0.000000e+00> : vector<2x128xf32>
    %118 = tpu.matmul %99, %3, %cst_29 {dimension_numbers = #tpu.dot_dimension_numbers<[1], [0], [0], [1], [0, 0, 1, 1], [], []>} : vector<2x32xf32>, vector<32x128xf32>, vector<2x128xf32> -> vector<2x128xf32>
    %119 = arith.addf %117, %118 : vector<2x128xf32>
    %120 = arith.mulf %119, %25 : vector<2x128xf32>
    %121 = math.tanh %120 : vector<2x128xf32>
    %122 = arith.mulf %121, %18 : vector<2x128xf32>
    %123 = arith.addf %122, %23 : vector<2x128xf32>
    %124 = vector.extract_strided_slice %123 {offsets = [0, 0], sizes = [2, 32], strides = [1, 1]} : vector<2x128xf32> to vector<2x32xf32>
    %125 = vector.extract_strided_slice %123 {offsets = [0, 32], sizes = [2, 32], strides = [1, 1]} : vector<2x128xf32> to vector<2x32xf32>
    %126 = vector.extract_strided_slice %123 {offsets = [0, 64], sizes = [2, 32], strides = [1, 1]} : vector<2x128xf32> to vector<2x32xf32>
    %127 = vector.extract_strided_slice %123 {offsets = [0, 96], sizes = [2, 32], strides = [1, 1]} : vector<2x128xf32> to vector<2x32xf32>
    %128 = arith.mulf %125, %97 : vector<2x32xf32>
    %129 = arith.mulf %124, %126 : vector<2x32xf32>
    %130 = arith.addf %128, %129 : vector<2x32xf32>
    %131 = math.tanh %130 : vector<2x32xf32>
    %132 = arith.mulf %127, %131 : vector<2x32xf32>
    %133 = vector.extract_strided_slice %29 {offsets = [6, 0], sizes = [2, 128], strides = [1, 1]} : vector<16x128xf32> to vector<2x128xf32>
    %cst_30 = arith.constant dense<0.000000e+00> : vector<2x128xf32>
    %134 = tpu.matmul %115, %2, %cst_30 {dimension_numbers = #tpu.dot_dimension_numbers<[1], [0], [0], [1], [0, 0, 1, 1], [], []>} : vector<2x32xf32>, vector<32x128xf32>, vector<2x128xf32> -> vector<2x128xf32>
    %135 = arith.addf %133, %134 : vector<2x128xf32>
    %136 = arith.mulf %135, %25 : vector<2x128xf32>
    %137 = math.tanh %136 : vector<2x128xf32>
    %138 = arith.mulf %137, %18 : vector<2x128xf32>
    %139 = arith.addf %138, %23 : vector<2x128xf32>
    %140 = vector.extract_strided_slice %139 {offsets = [0, 0], sizes = [2, 32], strides = [1, 1]} : vector<2x128xf32> to vector<2x32xf32>
    %141 = vector.extract_strided_slice %139 {offsets = [0, 32], sizes = [2, 32], strides = [1, 1]} : vector<2x128xf32> to vector<2x32xf32>
    %142 = vector.extract_strided_slice %139 {offsets = [0, 64], sizes = [2, 32], strides = [1, 1]} : vector<2x128xf32> to vector<2x32xf32>
    %143 = vector.extract_strided_slice %139 {offsets = [0, 96], sizes = [2, 32], strides = [1, 1]} : vector<2x128xf32> to vector<2x32xf32>
    %144 = arith.mulf %141, %113 : vector<2x32xf32>
    %145 = arith.mulf %140, %142 : vector<2x32xf32>
    %146 = arith.addf %144, %145 : vector<2x32xf32>
    %147 = math.tanh %146 : vector<2x32xf32>
    %148 = arith.mulf %143, %147 : vector<2x32xf32>
    %cst_31 = arith.constant dense<0.000000e+00> : vector<2x128xf32>
    %149 = tpu.matmul %148, %1, %cst_31 {dimension_numbers = #tpu.dot_dimension_numbers<[1], [0], [0], [1], [0, 0, 1, 1], [], []>} : vector<2x32xf32>, vector<32x128xf32>, vector<2x128xf32> -> vector<2x128xf32>
    %150 = arith.addf %149, %7 : vector<2x128xf32>
    %cst_32 = arith.constant dense<0.000000e+00> : vector<2x128xf32>
    %151 = tpu.matmul %132, %3, %cst_32 {dimension_numbers = #tpu.dot_dimension_numbers<[1], [0], [0], [1], [0, 0, 1, 1], [], []>} : vector<2x32xf32>, vector<32x128xf32>, vector<2x128xf32> -> vector<2x128xf32>
    %152 = arith.addf %150, %151 : vector<2x128xf32>
    %153 = arith.mulf %152, %25 : vector<2x128xf32>
    %154 = math.tanh %153 : vector<2x128xf32>
    %155 = arith.mulf %154, %18 : vector<2x128xf32>
    %156 = arith.addf %155, %23 : vector<2x128xf32>
    %157 = vector.extract_strided_slice %156 {offsets = [0, 0], sizes = [2, 32], strides = [1, 1]} : vector<2x128xf32> to vector<2x32xf32>
    %158 = vector.extract_strided_slice %156 {offsets = [0, 32], sizes = [2, 32], strides = [1, 1]} : vector<2x128xf32> to vector<2x32xf32>
    %159 = vector.extract_strided_slice %156 {offsets = [0, 64], sizes = [2, 32], strides = [1, 1]} : vector<2x128xf32> to vector<2x32xf32>
    %160 = vector.extract_strided_slice %156 {offsets = [0, 96], sizes = [2, 32], strides = [1, 1]} : vector<2x128xf32> to vector<2x32xf32>
    %161 = arith.mulf %158, %130 : vector<2x32xf32>
    %162 = arith.mulf %157, %159 : vector<2x32xf32>
    %163 = arith.addf %161, %162 : vector<2x32xf32>
    %164 = math.tanh %163 : vector<2x32xf32>
    %165 = arith.mulf %160, %164 : vector<2x32xf32>
    %166 = vector.extract_strided_slice %29 {offsets = [8, 0], sizes = [2, 128], strides = [1, 1]} : vector<16x128xf32> to vector<2x128xf32>
    %cst_33 = arith.constant dense<0.000000e+00> : vector<2x128xf32>
    %167 = tpu.matmul %148, %2, %cst_33 {dimension_numbers = #tpu.dot_dimension_numbers<[1], [0], [0], [1], [0, 0, 1, 1], [], []>} : vector<2x32xf32>, vector<32x128xf32>, vector<2x128xf32> -> vector<2x128xf32>
    %168 = arith.addf %166, %167 : vector<2x128xf32>
    %169 = arith.mulf %168, %25 : vector<2x128xf32>
    %170 = math.tanh %169 : vector<2x128xf32>
    %171 = arith.mulf %170, %18 : vector<2x128xf32>
    %172 = arith.addf %171, %23 : vector<2x128xf32>
    %173 = vector.extract_strided_slice %172 {offsets = [0, 0], sizes = [2, 32], strides = [1, 1]} : vector<2x128xf32> to vector<2x32xf32>
    %174 = vector.extract_strided_slice %172 {offsets = [0, 32], sizes = [2, 32], strides = [1, 1]} : vector<2x128xf32> to vector<2x32xf32>
    %175 = vector.extract_strided_slice %172 {offsets = [0, 64], sizes = [2, 32], strides = [1, 1]} : vector<2x128xf32> to vector<2x32xf32>
    %176 = vector.extract_strided_slice %172 {offsets = [0, 96], sizes = [2, 32], strides = [1, 1]} : vector<2x128xf32> to vector<2x32xf32>
    %177 = arith.mulf %174, %146 : vector<2x32xf32>
    %178 = arith.mulf %173, %175 : vector<2x32xf32>
    %179 = arith.addf %177, %178 : vector<2x32xf32>
    %180 = math.tanh %179 : vector<2x32xf32>
    %181 = arith.mulf %176, %180 : vector<2x32xf32>
    %cst_34 = arith.constant dense<0.000000e+00> : vector<2x128xf32>
    %182 = tpu.matmul %181, %1, %cst_34 {dimension_numbers = #tpu.dot_dimension_numbers<[1], [0], [0], [1], [0, 0, 1, 1], [], []>} : vector<2x32xf32>, vector<32x128xf32>, vector<2x128xf32> -> vector<2x128xf32>
    %183 = arith.addf %182, %7 : vector<2x128xf32>
    %cst_35 = arith.constant dense<0.000000e+00> : vector<2x128xf32>
    %184 = tpu.matmul %165, %3, %cst_35 {dimension_numbers = #tpu.dot_dimension_numbers<[1], [0], [0], [1], [0, 0, 1, 1], [], []>} : vector<2x32xf32>, vector<32x128xf32>, vector<2x128xf32> -> vector<2x128xf32>
    %185 = arith.addf %183, %184 : vector<2x128xf32>
    %186 = arith.mulf %185, %25 : vector<2x128xf32>
    %187 = math.tanh %186 : vector<2x128xf32>
    %188 = arith.mulf %187, %18 : vector<2x128xf32>
    %189 = arith.addf %188, %23 : vector<2x128xf32>
    %190 = vector.extract_strided_slice %189 {offsets = [0, 0], sizes = [2, 32], strides = [1, 1]} : vector<2x128xf32> to vector<2x32xf32>
    %191 = vector.extract_strided_slice %189 {offsets = [0, 32], sizes = [2, 32], strides = [1, 1]} : vector<2x128xf32> to vector<2x32xf32>
    %192 = vector.extract_strided_slice %189 {offsets = [0, 64], sizes = [2, 32], strides = [1, 1]} : vector<2x128xf32> to vector<2x32xf32>
    %193 = vector.extract_strided_slice %189 {offsets = [0, 96], sizes = [2, 32], strides = [1, 1]} : vector<2x128xf32> to vector<2x32xf32>
    %194 = arith.mulf %191, %163 : vector<2x32xf32>
    %195 = arith.mulf %190, %192 : vector<2x32xf32>
    %196 = arith.addf %194, %195 : vector<2x32xf32>
    %197 = math.tanh %196 : vector<2x32xf32>
    %198 = arith.mulf %193, %197 : vector<2x32xf32>
    %199 = vector.extract_strided_slice %29 {offsets = [10, 0], sizes = [2, 128], strides = [1, 1]} : vector<16x128xf32> to vector<2x128xf32>
    %cst_36 = arith.constant dense<0.000000e+00> : vector<2x128xf32>
    %200 = tpu.matmul %181, %2, %cst_36 {dimension_numbers = #tpu.dot_dimension_numbers<[1], [0], [0], [1], [0, 0, 1, 1], [], []>} : vector<2x32xf32>, vector<32x128xf32>, vector<2x128xf32> -> vector<2x128xf32>
    %201 = arith.addf %199, %200 : vector<2x128xf32>
    %202 = arith.mulf %201, %25 : vector<2x128xf32>
    %203 = math.tanh %202 : vector<2x128xf32>
    %204 = arith.mulf %203, %18 : vector<2x128xf32>
    %205 = arith.addf %204, %23 : vector<2x128xf32>
    %206 = vector.extract_strided_slice %205 {offsets = [0, 0], sizes = [2, 32], strides = [1, 1]} : vector<2x128xf32> to vector<2x32xf32>
    %207 = vector.extract_strided_slice %205 {offsets = [0, 32], sizes = [2, 32], strides = [1, 1]} : vector<2x128xf32> to vector<2x32xf32>
    %208 = vector.extract_strided_slice %205 {offsets = [0, 64], sizes = [2, 32], strides = [1, 1]} : vector<2x128xf32> to vector<2x32xf32>
    %209 = vector.extract_strided_slice %205 {offsets = [0, 96], sizes = [2, 32], strides = [1, 1]} : vector<2x128xf32> to vector<2x32xf32>
    %210 = arith.mulf %207, %179 : vector<2x32xf32>
    %211 = arith.mulf %206, %208 : vector<2x32xf32>
    %212 = arith.addf %210, %211 : vector<2x32xf32>
    %213 = math.tanh %212 : vector<2x32xf32>
    %214 = arith.mulf %209, %213 : vector<2x32xf32>
    %cst_37 = arith.constant dense<0.000000e+00> : vector<2x128xf32>
    %215 = tpu.matmul %214, %1, %cst_37 {dimension_numbers = #tpu.dot_dimension_numbers<[1], [0], [0], [1], [0, 0, 1, 1], [], []>} : vector<2x32xf32>, vector<32x128xf32>, vector<2x128xf32> -> vector<2x128xf32>
    %216 = arith.addf %215, %7 : vector<2x128xf32>
    %cst_38 = arith.constant dense<0.000000e+00> : vector<2x128xf32>
    %217 = tpu.matmul %198, %3, %cst_38 {dimension_numbers = #tpu.dot_dimension_numbers<[1], [0], [0], [1], [0, 0, 1, 1], [], []>} : vector<2x32xf32>, vector<32x128xf32>, vector<2x128xf32> -> vector<2x128xf32>
    %218 = arith.addf %216, %217 : vector<2x128xf32>
    %219 = arith.mulf %218, %25 : vector<2x128xf32>
    %220 = math.tanh %219 : vector<2x128xf32>
    %221 = arith.mulf %220, %18 : vector<2x128xf32>
    %222 = arith.addf %221, %23 : vector<2x128xf32>
    %223 = vector.extract_strided_slice %222 {offsets = [0, 0], sizes = [2, 32], strides = [1, 1]} : vector<2x128xf32> to vector<2x32xf32>
    %224 = vector.extract_strided_slice %222 {offsets = [0, 32], sizes = [2, 32], strides = [1, 1]} : vector<2x128xf32> to vector<2x32xf32>
    %225 = vector.extract_strided_slice %222 {offsets = [0, 64], sizes = [2, 32], strides = [1, 1]} : vector<2x128xf32> to vector<2x32xf32>
    %226 = vector.extract_strided_slice %222 {offsets = [0, 96], sizes = [2, 32], strides = [1, 1]} : vector<2x128xf32> to vector<2x32xf32>
    %227 = arith.mulf %224, %196 : vector<2x32xf32>
    %228 = arith.mulf %223, %225 : vector<2x32xf32>
    %229 = arith.addf %227, %228 : vector<2x32xf32>
    %230 = math.tanh %229 : vector<2x32xf32>
    %231 = arith.mulf %226, %230 : vector<2x32xf32>
    %232 = vector.extract_strided_slice %29 {offsets = [12, 0], sizes = [2, 128], strides = [1, 1]} : vector<16x128xf32> to vector<2x128xf32>
    %cst_39 = arith.constant dense<0.000000e+00> : vector<2x128xf32>
    %233 = tpu.matmul %214, %2, %cst_39 {dimension_numbers = #tpu.dot_dimension_numbers<[1], [0], [0], [1], [0, 0, 1, 1], [], []>} : vector<2x32xf32>, vector<32x128xf32>, vector<2x128xf32> -> vector<2x128xf32>
    %234 = arith.addf %232, %233 : vector<2x128xf32>
    %235 = arith.mulf %234, %25 : vector<2x128xf32>
    %236 = math.tanh %235 : vector<2x128xf32>
    %237 = arith.mulf %236, %18 : vector<2x128xf32>
    %238 = arith.addf %237, %23 : vector<2x128xf32>
    %239 = vector.extract_strided_slice %238 {offsets = [0, 0], sizes = [2, 32], strides = [1, 1]} : vector<2x128xf32> to vector<2x32xf32>
    %240 = vector.extract_strided_slice %238 {offsets = [0, 32], sizes = [2, 32], strides = [1, 1]} : vector<2x128xf32> to vector<2x32xf32>
    %241 = vector.extract_strided_slice %238 {offsets = [0, 64], sizes = [2, 32], strides = [1, 1]} : vector<2x128xf32> to vector<2x32xf32>
    %242 = vector.extract_strided_slice %238 {offsets = [0, 96], sizes = [2, 32], strides = [1, 1]} : vector<2x128xf32> to vector<2x32xf32>
    %243 = arith.mulf %240, %212 : vector<2x32xf32>
    %244 = arith.mulf %239, %241 : vector<2x32xf32>
    %245 = arith.addf %243, %244 : vector<2x32xf32>
    %246 = math.tanh %245 : vector<2x32xf32>
    %247 = arith.mulf %242, %246 : vector<2x32xf32>
    %cst_40 = arith.constant dense<0.000000e+00> : vector<2x128xf32>
    %248 = tpu.matmul %247, %1, %cst_40 {dimension_numbers = #tpu.dot_dimension_numbers<[1], [0], [0], [1], [0, 0, 1, 1], [], []>} : vector<2x32xf32>, vector<32x128xf32>, vector<2x128xf32> -> vector<2x128xf32>
    %249 = arith.addf %248, %7 : vector<2x128xf32>
    %cst_41 = arith.constant dense<0.000000e+00> : vector<2x128xf32>
    %250 = tpu.matmul %231, %3, %cst_41 {dimension_numbers = #tpu.dot_dimension_numbers<[1], [0], [0], [1], [0, 0, 1, 1], [], []>} : vector<2x32xf32>, vector<32x128xf32>, vector<2x128xf32> -> vector<2x128xf32>
    %251 = arith.addf %249, %250 : vector<2x128xf32>
    %252 = arith.mulf %251, %25 : vector<2x128xf32>
    %253 = math.tanh %252 : vector<2x128xf32>
    %254 = arith.mulf %253, %18 : vector<2x128xf32>
    %255 = arith.addf %254, %23 : vector<2x128xf32>
    %256 = vector.extract_strided_slice %255 {offsets = [0, 0], sizes = [2, 32], strides = [1, 1]} : vector<2x128xf32> to vector<2x32xf32>
    %257 = vector.extract_strided_slice %255 {offsets = [0, 32], sizes = [2, 32], strides = [1, 1]} : vector<2x128xf32> to vector<2x32xf32>
    %258 = vector.extract_strided_slice %255 {offsets = [0, 64], sizes = [2, 32], strides = [1, 1]} : vector<2x128xf32> to vector<2x32xf32>
    %259 = vector.extract_strided_slice %255 {offsets = [0, 96], sizes = [2, 32], strides = [1, 1]} : vector<2x128xf32> to vector<2x32xf32>
    %260 = arith.mulf %257, %229 : vector<2x32xf32>
    %261 = arith.mulf %256, %258 : vector<2x32xf32>
    %262 = arith.addf %260, %261 : vector<2x32xf32>
    %263 = math.tanh %262 : vector<2x32xf32>
    %264 = arith.mulf %259, %263 : vector<2x32xf32>
    %265 = vector.extract_strided_slice %29 {offsets = [14, 0], sizes = [2, 128], strides = [1, 1]} : vector<16x128xf32> to vector<2x128xf32>
    %cst_42 = arith.constant dense<0.000000e+00> : vector<2x128xf32>
    %266 = tpu.matmul %247, %2, %cst_42 {dimension_numbers = #tpu.dot_dimension_numbers<[1], [0], [0], [1], [0, 0, 1, 1], [], []>} : vector<2x32xf32>, vector<32x128xf32>, vector<2x128xf32> -> vector<2x128xf32>
    %267 = arith.addf %265, %266 : vector<2x128xf32>
    %268 = arith.mulf %267, %25 : vector<2x128xf32>
    %269 = math.tanh %268 : vector<2x128xf32>
    %270 = arith.mulf %269, %18 : vector<2x128xf32>
    %271 = arith.addf %270, %23 : vector<2x128xf32>
    %272 = vector.extract_strided_slice %271 {offsets = [0, 0], sizes = [2, 32], strides = [1, 1]} : vector<2x128xf32> to vector<2x32xf32>
    %273 = vector.extract_strided_slice %271 {offsets = [0, 32], sizes = [2, 32], strides = [1, 1]} : vector<2x128xf32> to vector<2x32xf32>
    %274 = vector.extract_strided_slice %271 {offsets = [0, 64], sizes = [2, 32], strides = [1, 1]} : vector<2x128xf32> to vector<2x32xf32>
    %275 = vector.extract_strided_slice %271 {offsets = [0, 96], sizes = [2, 32], strides = [1, 1]} : vector<2x128xf32> to vector<2x32xf32>
    %276 = arith.mulf %273, %245 : vector<2x32xf32>
    %277 = arith.mulf %272, %274 : vector<2x32xf32>
    %278 = arith.addf %276, %277 : vector<2x32xf32>
    %279 = math.tanh %278 : vector<2x32xf32>
    %280 = arith.mulf %275, %279 : vector<2x32xf32>
    %cst_43 = arith.constant dense<0.000000e+00> : vector<2x128xf32>
    %281 = tpu.matmul %280, %1, %cst_43 {dimension_numbers = #tpu.dot_dimension_numbers<[1], [0], [0], [1], [0, 0, 1, 1], [], []>} : vector<2x32xf32>, vector<32x128xf32>, vector<2x128xf32> -> vector<2x128xf32>
    %282 = arith.addf %281, %7 : vector<2x128xf32>
    %cst_44 = arith.constant dense<0.000000e+00> : vector<2x128xf32>
    %283 = tpu.matmul %264, %3, %cst_44 {dimension_numbers = #tpu.dot_dimension_numbers<[1], [0], [0], [1], [0, 0, 1, 1], [], []>} : vector<2x32xf32>, vector<32x128xf32>, vector<2x128xf32> -> vector<2x128xf32>
    %284 = arith.addf %282, %283 : vector<2x128xf32>
    %285 = arith.mulf %284, %25 : vector<2x128xf32>
    %286 = math.tanh %285 : vector<2x128xf32>
    %287 = arith.mulf %286, %18 : vector<2x128xf32>
    %288 = arith.addf %287, %23 : vector<2x128xf32>
    %289 = vector.extract_strided_slice %288 {offsets = [0, 0], sizes = [2, 32], strides = [1, 1]} : vector<2x128xf32> to vector<2x32xf32>
    %290 = vector.extract_strided_slice %288 {offsets = [0, 32], sizes = [2, 32], strides = [1, 1]} : vector<2x128xf32> to vector<2x32xf32>
    %291 = vector.extract_strided_slice %288 {offsets = [0, 64], sizes = [2, 32], strides = [1, 1]} : vector<2x128xf32> to vector<2x32xf32>
    %292 = vector.extract_strided_slice %288 {offsets = [0, 96], sizes = [2, 32], strides = [1, 1]} : vector<2x128xf32> to vector<2x32xf32>
    %293 = arith.mulf %290, %262 : vector<2x32xf32>
    %294 = arith.mulf %289, %291 : vector<2x32xf32>
    %295 = arith.addf %293, %294 : vector<2x32xf32>
    %296 = math.tanh %295 : vector<2x32xf32>
    %297 = arith.mulf %292, %296 : vector<2x32xf32>
    %cst_45 = arith.constant 0.000000e+00 : f32
    %298 = vector.broadcast %cst_45 : f32 to vector<2x32xf32>
    %299 = arith.maximumf %297, %298 : vector<2x32xf32>
    %c0_46 = arith.constant 0 : index
    %c0_47 = arith.constant 0 : index
    %300 = vector.load %arg7[%c0_46, %c0_47] : memref<32x64xf32, #tpu.memory_space<vmem>>, vector<32x64xf32>
    %cst_48 = arith.constant dense<0.000000e+00> : vector<2x64xf32>
    %301 = tpu.matmul %299, %300, %cst_48 {dimension_numbers = #tpu.dot_dimension_numbers<[1], [0], [0], [1], [0, 0, 1, 1], [], []>} : vector<2x32xf32>, vector<32x64xf32>, vector<2x64xf32> -> vector<2x64xf32>
    %c0_49 = arith.constant 0 : index
    %c0_50 = arith.constant 0 : index
    %302 = vector.load %arg8[%c0_49, %c0_50] : memref<1x64xf32, #tpu.memory_space<vmem>>, vector<1x64xf32>
    %303 = vector.broadcast %302 : vector<1x64xf32> to vector<2x64xf32>
    %304 = arith.addf %301, %303 : vector<2x64xf32>
    %cst_51 = arith.constant 0.000000e+00 : f32
    %305 = vector.broadcast %cst_51 : f32 to vector<2x64xf32>
    %306 = arith.maximumf %304, %305 : vector<2x64xf32>
    %c0_52 = arith.constant 0 : index
    %c0_53 = arith.constant 0 : index
    %307 = vector.load %arg9[%c0_52, %c0_53] : memref<64x128xf32, #tpu.memory_space<vmem>>, vector<64x128xf32>
    %cst_54 = arith.constant dense<0.000000e+00> : vector<2x128xf32>
    %308 = tpu.matmul %306, %307, %cst_54 {dimension_numbers = #tpu.dot_dimension_numbers<[1], [0], [0], [1], [0, 0, 1, 1], [], []>} : vector<2x64xf32>, vector<64x128xf32>, vector<2x128xf32> -> vector<2x128xf32>
    %c0_55 = arith.constant 0 : index
    %c0_56 = arith.constant 0 : index
    %309 = vector.load %arg10[%c0_55, %c0_56] : memref<1x128xf32, #tpu.memory_space<vmem>>, vector<1x128xf32>
    %310 = vector.broadcast %309 : vector<1x128xf32> to vector<2x128xf32>
    %311 = arith.addf %308, %310 : vector<2x128xf32>
    %c0_57 = arith.constant 0 : index
    %c0_58 = arith.constant 0 : index
    %312 = vector.load %arg11[%c0_57, %c0_58] : memref<2x128xf32, #tpu.memory_space<vmem>>, vector<2x128xf32>
    tpu.vector_store %arg11[%c0_57, %c0_58], %311 {strides = array<i32>} : memref<2x128xf32, #tpu.memory_space<vmem>>, vector<2x128xf32>,
    return
  }
}

</mosaic_0001>

<bundles_post_ra>
// kernel: tpu_custom_call.1
= control target key start
LH: loop header
LB: loop body
LE: loop exit
PB: predicated region body
PF: predicated region fallthrough
CT: control target
= control target key end

     0   :  { %16 = vsyncpa [#allocation3], 0  ;;  %s3948_s0 = inlined_call_operand.vmem [shape: f32[16,4], index: 0, kind: input, shape index: {}]   ;;  %s3949_s1 = inlined_call_operand.hbm [shape: f32[4,128], index: 1, kind: input, shape index: {}]   ;;  %s3950_s2 = inlined_call_operand.hbm [shape: f32[32,128], index: 2, kind: input, shape index: {}]   ;;  %s3951_s3 = inlined_call_operand.hbm [shape: f32[1,128], index: 3, kind: input, shape index: {}]   ;;  %s3952_s4 = inlined_call_operand.hbm [shape: f32[32,128], index: 4, kind: input, shape index: {}]   ;;  %s3953_s5 = inlined_call_operand.hbm [shape: f32[32,128], index: 5, kind: input, shape index: {}]   ;;  %s3954_s6 = inlined_call_operand.hbm [shape: f32[1,128], index: 6, kind: input, shape index: {}]   ;;  %s3955_s7 = inlined_call_operand.vmem [shape: f32[32,64], index: 7, kind: input, shape index: {}]   ;;  %s3956_s8 = inlined_call_operand.vmem [shape: f32[1,64], index: 8, kind: input, shape index: {}]   ;;  %s3957_s9 = inlined_call_operand.hbm [shape: f32[64,128], index: 9, kind: input, shape index: {}]   ;;  %s3958_s10 = inlined_call_operand.vmem [shape: f32[1,128], index: 10, kind: input, shape index: {}]   ;;  %s3959_s11 = inlined_call_operand.hbm [shape: f32[2,128], index: 11, kind: output, shape index: {}]  }
   0x1   :  { %17 = vsyncpa [#allocation6], 0 }
   0x2   :  { %18 = vsyncpa [#allocation9], 0 }
   0x3   :  { %19 = vsyncpa [#allocation12], 0 }
   0x4   :  { %20 = vsyncpa [#allocation4], 0  ;;  %s3328_s17 = smov [#allocation5]  }
   0x5   :  { %s38_s18 = sshll.u32 %s3328_s17, 4  ;;  %s39_s18 = int_to_ptr.vmem [resolvable:$true] %s38_s18 }
   0x6   :  { %s3166_s19 = scalar_lea.vmem %s39_s18, 512  ;;  %p3171_p1 = scmp.lt.s32.totalorder %s39_s18, %s39_s18 }
   0x7   :  { %p3167_p0 = scmp.ne.s32.totalorder %s39_s18, %s3166_s19  ;;  %p3172_p2 = scmp.lt.s32.totalorder %s3166_s19, %s3166_s19 }
   0x9   :  { %p3173_p3 = por %p3172_p2, %p3171_p1 }
   0xb   :  { %p3174_p4 = pnand %p3173_p3, %p3167_p0 }
   0xd   :  { %3177 = shalt.err (!%p3174_p4)
}
   0xe   :  { %s3329_s20 = smov 128   ;;  %s3330_s21 = smov 8  }
   0xf   :  { %44 = dma.hbm_to_vmem [thread:$0]  %s3950_s2, 512, %s39_s18, [#allocation6], %s3329_s20, %s3329_s20, %s3330_s21  }
  0x10   :  { %s3331_s24 = smov [#allocation8]   ;;  %s3332_s26 = smov [#allocation11]  }
  0x11   :  { %s60_s25 = sshll.u32 %s3331_s24, 4  ;;  %s85_s27 = sshll.u32 %s3332_s26, 4  ;;  %s61_s25 = int_to_ptr.vmem [resolvable:$true] %s60_s25  ;;  %s86_s27 = int_to_ptr.vmem [resolvable:$true] %s85_s27 }
  0x12   :  { %s3186_s28 = scalar_lea.vmem %s61_s25, 512  ;;  %p3191_p6 = scmp.lt.s32.totalorder %s61_s25, %s61_s25 }
  0x13   :  { %p3187_p5 = scmp.ne.s32.totalorder %s61_s25, %s3186_s28  ;;  %p3192_p7 = scmp.lt.s32.totalorder %s3186_s28, %s3186_s28 }
  0x15   :  { %p3193_p8 = por %p3192_p7, %p3191_p6 }
  0x17   :  { %p3194_p9 = pnand %p3193_p8, %p3187_p5 }
  0x19   :  { %3197 = shalt.err (!%p3194_p9)
}
  0x1a   :  { %66 = dma.hbm_to_vmem [thread:$0]  %s3952_s4, 512, %s61_s25, [#allocation9], %s3329_s20, %s3329_s20, %s3330_s21  }
  0x1b   :  { %s3206_s2 = scalar_lea.vmem %s86_s27, 16  ;;  %s3210_s12 = scalar_lea.vmem %s86_s27, 32 }
  0x1c   :  { %p3207_p10 = scmp.ne.s32.totalorder %s86_s27, %s3206_s2  ;;  %p3211_p11 = scmp.lt.s32.totalorder %s86_s27, %s86_s27 }
  0x1d   :  { %p3212_p12 = scmp.lt.s32.totalorder %s3210_s12, %s3206_s2 }
  0x1f   :  { %p3213_p13 = por %p3212_p12, %p3211_p11 }
  0x21   :  { %p3214_p0 = pnand %p3213_p13, %p3207_p10 }
  0x23   :  { %3217 = shalt.err (!%p3214_p0)
}
  0x24   :  { %88 = dma.hbm_to_vmem [thread:$0]  %s3954_s6, 16, %s86_s27, [#allocation12]  }
  0x25   :  { %s3333_s15 = smov [#allocation2]   ;;  %s3334_s17 = smov [#allocation7]  }
  0x26   :  { %s29_s16 = sshll.u32 %s3333_s15, 4  ;;  %s51_s18 = sshll.u32 %s3334_s17, 4  ;;  %s30_s16 = int_to_ptr.vmem [resolvable:$true] %s29_s16  ;;  %s52_s18 = int_to_ptr.vmem [resolvable:$true] %s51_s18 }
  0x27   :  { %s3226_s19 = scalar_lea.vmem %s30_s16, 64  ;;  %p3231_p2 = scmp.lt.s32.totalorder %s30_s16, %s30_s16 }
  0x28   :  { %p3227_p1 = scmp.ne.s32.totalorder %s30_s16, %s3226_s19  ;;  %p3232_p3 = scmp.lt.s32.totalorder %s3226_s19, %s3226_s19 }
  0x2a   :  { %p3233_p4 = por %p3232_p3, %p3231_p2 }
  0x2c   :  { %p3234_p5 = pnand %p3233_p4, %p3227_p1 }
  0x2e   :  { %3237 = shalt.err (!%p3234_p5)
}
  0x2f   :  { %32 = dma.hbm_to_vmem [thread:$0]  %s3949_s1, 64, %s30_s16, [#allocation3]  }
  0x30   :  { %s3246_s23 = scalar_lea.vmem %s52_s18, 16  ;;  %s3250_s6 = scalar_lea.vmem %s52_s18, 32 }
  0x31   :  { %p3247_p6 = scmp.ne.s32.totalorder %s52_s18, %s3246_s23  ;;  %p3251_p7 = scmp.lt.s32.totalorder %s52_s18, %s52_s18 }
  0x32   :  { %p3252_p8 = scmp.lt.s32.totalorder %s3250_s6, %s3246_s23 }
  0x34   :  { %p3253_p9 = por %p3252_p8, %p3251_p7 }
  0x36   :  { %p3254_p10 = pnand %p3253_p9, %p3247_p6 }
  0x38   :  { %3257 = shalt.err (!%p3254_p10)
}
  0x39   :  { %54 = dma.hbm_to_vmem [thread:$0]  %s3951_s3, 16, %s52_s18, [#allocation6]  }
  0x3a   :  { %s3335_s26 = smov [#allocation10]   ;;  %s3336_s28 = smov [#allocation13]  }
  0x3b   :  { %s72_s27 = sshll.u32 %s3335_s26, 4  ;;  %s98_s29 = sshll.u32 %s3336_s28, 4  ;;  %s73_s27 = int_to_ptr.vmem [resolvable:$true] %s72_s27  ;;  %s99_s29 = int_to_ptr.vmem [resolvable:$true] %s98_s29 }
  0x3c   :  { %s3266_s30 = scalar_lea.vmem %s73_s27, 512  ;;  %p3271_p12 = scmp.lt.s32.totalorder %s73_s27, %s73_s27 }
  0x3d   :  { %p3267_p11 = scmp.ne.s32.totalorder %s73_s27, %s3266_s30  ;;  %p3272_p13 = scmp.lt.s32.totalorder %s3266_s30, %s3266_s30 }
  0x3f   :  { %p3273_p0 = por %p3272_p13, %p3271_p12 }
  0x41   :  { %p3274_p1 = pnand %p3273_p0, %p3267_p11 }
  0x43   :  { %3277 = shalt.err (!%p3274_p1)
}
  0x44   :  { %78 = dma.hbm_to_vmem [thread:$0]  %s3953_s5, 512, %s73_s27, [#allocation9], %s3329_s20, %s3329_s20, %s3330_s21  }
  0x45   :  { %s3286_s3 = scalar_lea.vmem %s99_s29, 1024  ;;  %p3291_p3 = scmp.lt.s32.totalorder %s99_s29, %s99_s29 }
  0x46   :  { %p3287_p2 = scmp.ne.s32.totalorder %s99_s29, %s3286_s3  ;;  %p3292_p4 = scmp.lt.s32.totalorder %s3286_s3, %s3286_s3 }
  0x48   :  { %p3293_p5 = por %p3292_p4, %p3291_p3 }
  0x4a   :  { %p3294_p6 = pnand %p3293_p5, %p3287_p2 }
  0x4c   :  { %3297 = shalt.err (!%p3294_p6)
}
  0x4d   :  { %104 = dma.hbm_to_vmem [thread:$0]  %s3957_s9, 1024, %s99_s29, [#allocation12], %s3329_s20, %s3329_s20, %s3330_s21  }
  0x4e   :  { %3318 = dma.done.wait [#allocation3], 64  }
  0x4f   :  { %3319 = vsyncadd [#allocation3], 4294967232 }
  0x50   :  { %3320 = dma.done.wait [#allocation6], 528  }
  0x51   :  { %3321 = vsyncadd [#allocation6], 4294966768 }
  0x52   :  { %3322 = dma.done.wait [#allocation9], 1024  }
  0x53   :  { %3323 = vsyncadd [#allocation9], 4294966272 }
  0x54   :  { %3324 = dma.done.wait [#allocation12], 1040  }
  0x55   :  { %3325 = vsyncadd [#allocation12], 4294966256  ;;  %v3337_v0 = vmov 0.0   ;;  %vm3338_vm0 = vmmov 0   ;;  %vm171_vm1 = vcmask 1043456   ;;  %vm164_vm2 = vcmask 31744  }
  0x56   :  { %2786 = vmatprep.subr.mxu0 %v3337_v0  ;;  %2794 = vmatprep.mubr.msk.f32.mxu0 %vm3338_vm0, %v3337_v0  ;;  %v128_v1 = vld [vmem:[#allocation2] sm:$0xf]  ;;  %v157_v3 = vld [vmem:[%s3948_s0 + $0x8] sm:$0xff]  ;;  %v3448_v5 = vld [vmem:[#allocation5 + $0x10] sm:$0xff]  ;;  %v149_v8 = vlaneseq  ;;  %v3339_v15 = vmov 0.5   ;;  %s3341_s14 = smov 32  }
  0x57   :  { %v156_v2 = vld [vmem:[%s3948_s0] sm:$0xff]  ;;  %2770 = vmatprep.subr.msk.mxu1 %vm171_vm1, %v128_v1  ;;  %v3454_v6 = vld [vmem:[#allocation5 + $0x8] sm:$0xff]  ;;  %s3340_s0 = smov 64   ;;  %v3486_v31 = vld [vmem:[#allocation8 + $0x10] sm:$0xff]  ;;  %vm250_vm6 = vcmask 261120   ;;  %vm2509_vm7 = vcmask 523264  }
  0x58   :  { %2772 = vmatprep.mubr.msk.f32.mxu1 %vm164_vm2, %v156_v2  ;;  %v3445_v4 = vld [vmem:[#allocation5 + $0x18] sm:$0xff]  ;;  %2771 = vmatpush3.msk.msra.mxu1 %vm171_vm1, %v128_v1  ;;  %v3458_v7 = vld [vmem:[#allocation5] sm:$0xff]  ;;  %v150_v10 = vand.u32 127, %v149_v8  ;;  %v3495_v34 = vld [vmem:[#allocation8 + $0x8] sm:$0xff]  ;;  %s3342_s26 = smov [#allocation14]  }
  0x59   :  { %2773 = vmatmul.mubr.msk.f32.vlgmr.msra.gmra.mxu1 %vm164_vm2, %v157_v3  ;;  %2775 = vmatprep.subr.mxu1 %v3337_v0  ;;  %v2603_v9 = vld [vmem:[#allocation7] ss:$0 sm:$0xff]  ;;  %v3492_v33 = vld [vmem:[#allocation10 + $0x10] sm:$0xff]  ;;  %v3498_v35 = vld [vmem:[#allocation10 + $0x8] sm:$0xff]  ;;  %s2590_s27 = sshll.u32 %s3342_s26, 4  ;;  %s2591_s27 = int_to_ptr.vmem [resolvable:$true] %s2590_s27 }
  0x5a   :  { %2776 = vmatpush3.msra.mxu1 %v3445_v4  ;;  %2783 = vmatprep.mubr.msk.f32.mxu1 %vm3338_vm0, %v3337_v0  ;;  %vm151_vm3 = vcmp.ge.s32.totalorder %v150_v10, 64  ;;  %vm152_vm4 = vcmp.lt.s32.totalorder %v150_v10, 96  ;;  %v3484_v30 = vld [vmem:[#allocation8 + $0x18] sm:$0xff]  ;;  %v3503_v36 = vld [vmem:[#allocation8] sm:$0xff]  ;;  %s3298_s28 = scalar_lea.vmem %s2591_s27, 32  ;;  %p3303_p8 = scmp.lt.s32.totalorder %s2591_s27, %s2591_s27 }
  0x5b   :  { %2777 = vmatprep.subr.mxu1 %v3337_v0  ;;  %vm153_vm5 = vmand %vm151_vm3, %vm152_vm4  ;;  %v3488_v32 = vld [vmem:[#allocation10 + $0x18] sm:$0xff]  ;;  %2787 = vmatpush3.msra.mxu0 %v3484_v30  ;;  %v3513_v38 = vld [vmem:[#allocation10] sm:$0xff]  ;;  %p3299_p7 = scmp.ne.s32.totalorder %s2591_s27, %s3298_s28  ;;  %p3304_p9 = scmp.lt.s32.totalorder %s3298_s28, %s3298_s28 }
  0x5c   :  { %2778 = vmatpush3.msra.mxu1 %v3448_v5  ;;  %v3471_v16 = vsel %vm153_vm5, 1.0, %v3339_v15  ;;  %v3475_v22 = vsel %vm153_vm5, 0.0, %v3339_v15  ;;  %2788 = vmatprep.subr.mxu0 %v3337_v0  ;;  %v3551_v44 = vld [vmem:[#allocation11] ss:$0 sm:$0xff] }
  0x5d   :  { %2779 = vmatprep.subr.mxu1 %v3337_v0  ;;  %2789 = vmatpush3.msra.mxu0 %v3486_v31  ;;  %p3305_p10 = por %p3304_p9, %p3303_p8 }
  0x5e   :  { %2780 = vmatpush3.msra.mxu1 %v3454_v6  ;;  %2790 = vmatprep.subr.mxu0 %v3337_v0 }
  0x5f   :  { %2781 = vmatprep.subr.mxu1 %v3337_v0  ;;  %2791 = vmatpush3.msra.mxu0 %v3495_v34  ;;  %p3306_p11 = pnand %p3305_p10, %p3299_p7 }
  0x60   :  { %2782 = vmatpush3.msra.mxu1 %v3458_v7  ;;  %2792 = vmatprep.subr.mxu0 %v3337_v0 }
  0x61   :  { %2784 = vmatmul.mubr.f32.vlgmr.msra.gmra.mxu1 %v3337_v0  ;;  %2797 = vmatprep.subr.mxu1 %v3337_v0 }
  0x62   :  { %2805 = vmatprep.mubr.msk.f32.mxu1 %vm3338_vm0, %v3337_v0  ;;  %2798 = vmatpush3.msra.mxu1 %v3488_v32 }
  0x63   :  { %2799 = vmatprep.subr.mxu1 %v3337_v0  ;;  %2793 = vmatpush3.msra.mxu0 %v3503_v36 }
  0x64   :  { %2800 = vmatpush3.msra.mxu1 %v3492_v33  ;;  %2808 = vmatprep.subr.mxu0 %v3337_v0 }
  0x65   :  { %2801 = vmatprep.subr.mxu1 %v3337_v0 }
  0x66   :  { %2802 = vmatpush3.msra.mxu1 %v3498_v35 }
  0x67   :  { %2803 = vmatprep.subr.mxu1 %v3337_v0 }
  0x68   :  { %2804 = vmatpush3.msra.mxu1 %v3513_v38 }
  0x69   :  { %2806 = vmatmul.mubr.f32.vlgmr.msra.gmra.mxu1 %v3337_v0  ;;  %2819 = vmatprep.subr.mxu1 %v3337_v0 }
  0x6a   :  { %2820 = vmatpush3.msra.mxu1 %v3484_v30  ;;  %2827 = vmatprep.mubr.msk.f32.mxu1 %vm3338_vm0, %v3337_v0 }
  0x6b   :  { %2821 = vmatprep.subr.mxu1 %v3337_v0 }
  0x6c   :  { %2822 = vmatpush3.msra.mxu1 %v3486_v31 }
  0x6d   :  { %2823 = vmatprep.subr.mxu1 %v3337_v0 }
  0x6e   :  { %2824 = vmatpush3.msra.mxu1 %v3495_v34 }
  0x6f   :  { %2825 = vmatprep.subr.mxu1 %v3337_v0 }
  0x70   :  { %2826 = vmatpush3.msra.mxu1 %v3503_v36 }
  0x71   :  { %2841 = vmatprep.subr.mxu1 %v3337_v0 }
 0x119   :  { %v2774_v11 = vpop.f32.mrf.mxu1 }
 0x11a   :  { %v3467_v12 = vadd.f32 %v2774_v11, %v2603_v9 }
 0x11b   :  { %v241_v13 = vpop.f32.mrf.mxu1 }
 0x11c   :  { %v3469_v14 = vadd.f32 %v2603_v9, %v241_v13 }
 0x121   :  { %v320_v17 = vpop.f32.mrf.mxu1 }
 0x122   :  { %v324_v18 = vadd.f32 %v320_v17, %v3469_v14 }
 0x123   :  { %v2785_v19 = vpop.f32.mrf.mxu1 }
 0x124   :  { %v325_v20 = vmul.f32 %v324_v18, %v3471_v16 }
 0x126   :  { %3084 = vtanh.f32 %v325_v20 }
 0x129   :  { %v487_v42 = vpop.f32.mrf.mxu1 }
 0x12b   :  { %v2807_v43 = vpop.f32.mrf.mxu1 }
 0x133   :  { %v3085_v21 = vpop.eup %3084 }
 0x134   :  { %v327_v23 = vmul.f32 %v3085_v21, %v3471_v16 }
 0x136   :  { %v328_v24 = vadd.f32 %v327_v23, %v3475_v22 }
 0x138   :  { %331 = vrot.lane.b32.xlu0 %v328_v24, %s3340_s0  ;;  %v329_v27 = vmul.f32 0.0, %v328_v24 }
 0x1aa   :  { %v332_v25 = vpop.permute.xlu0 %331 }
 0x1ab   :  { %v334_v26 = vmul.f32 %v332_v25, %v328_v24 }
 0x1ad   :  { %336 = vrot.lane.b32.xlu0 %v334_v26, %s3341_s14 }
 0x21f   :  { %v337_v28 = vpop.permute.xlu0 %336 }
 0x220   :  { %v3481_v29 = vadd.f32 %v337_v28, %v329_v27 }
 0x222   :  { %3086 = vtanh.f32 %v3481_v29  ;;  %v592_v2 = vrot.slane %v3481_v29, 6 }
 0x22f   :  { %v3087_v37 = vpop.eup %3086 }
 0x230   :  { %342 = vrot.lane.b32.xlu1 %v3087_v37, %s3340_s0 }
 0x2a2   :  { %v343_v39 = vpop.permute.xlu1 %342 }
 0x2a3   :  { %v345_v40 = vmul.f32 %v343_v39, %v328_v24 }
 0x2a5   :  { %347 = vrot.lane.b32.xlu1 %v345_v40, %s3341_s14 }
 0x317   :  { %v348_v41 = vpop.permute.xlu1 %347 }
 0x318   :  { %2795 = vmatmul.mubr.msk.f32.vlgmr.msra.gmra.mxu0 %vm250_vm6, %v348_v41 }
 0x319   :  { %2809 = vmatpush3.msra.mxu0 %v3445_v4  ;;  %2816 = vmatprep.mubr.msk.f32.mxu0 %vm3338_vm0, %v3337_v0 }
 0x31a   :  { %2810 = vmatprep.subr.mxu0 %v3337_v0 }
 0x31b   :  { %2811 = vmatpush3.msra.mxu0 %v3448_v5 }
 0x31c   :  { %2812 = vmatprep.subr.mxu0 %v3337_v0 }
 0x31d   :  { %2813 = vmatpush3.msra.mxu0 %v3454_v6 }
 0x31e   :  { %2814 = vmatprep.subr.mxu0 %v3337_v0 }
 0x31f   :  { %2815 = vmatpush3.msra.mxu0 %v3458_v7 }
 0x320   :  { %2817 = vmatmul.mubr.msk.f32.vlgmr.msra.gmra.mxu0 %vm250_vm6, %v348_v41  ;;  %2830 = vmatprep.subr.mxu0 %v3337_v0 }
 0x321   :  { %2831 = vmatpush3.msra.mxu0 %v3488_v32  ;;  %2838 = vmatprep.mubr.msk.f32.mxu0 %vm3338_vm0, %v3337_v0 }
 0x322   :  { %2832 = vmatprep.subr.mxu0 %v3337_v0 }
 0x323   :  { %2833 = vmatpush3.msra.mxu0 %v3492_v33 }
 0x324   :  { %2834 = vmatprep.subr.mxu0 %v3337_v0 }
 0x325   :  { %2835 = vmatpush3.msra.mxu0 %v3498_v35 }
 0x326   :  { %2836 = vmatprep.subr.mxu0 %v3337_v0 }
 0x327   :  { %2837 = vmatpush3.msra.mxu0 %v3513_v38 }
 0x328   :  { %2852 = vmatprep.subr.mxu0 %v3337_v0 }
 0x3d8   :  { %v417_v45 = vpop.f32.mrf.mxu0 }
 0x3d9   :  { %v418_v46 = vadd.f32 %v3551_v44, %v417_v45 }
 0x3da   :  { %v2796_v47 = vpop.f32.mrf.mxu0 }
 0x3db   :  { %v491_v48 = vadd.f32 %v487_v42, %v418_v46 }
 0x3dd   :  { %v492_v51 = vmul.f32 %v491_v48, %v3471_v16 }
 0x3df   :  { %3088 = vtanh.f32 %v492_v51 }
 0x3e0   :  { %v579_v49 = vpop.f32.mrf.mxu0 }
 0x3e1   :  { %v584_v50 = vrot.slane %v579_v49, 6 }
 0x3e2   :  { %v2818_v52 = vpop.f32.mrf.mxu0 }
 0x3e3   :  { %v586_v53 = vadd.f32 %v584_v50, %v3469_v14 }
 0x3e5   :  { %v587_v54 = vmul.f32 %v586_v53, %v3471_v16 }
 0x3e7   :  { %3090 = vtanh.f32 %v587_v54 }
 0x3ec   :  { %v3089_v55 = vpop.eup %3088 }
 0x3ed   :  { %v494_v59 = vmul.f32 %v3089_v55, %v3471_v16 }
 0x3ef   :  { %v495_v60 = vadd.f32 %v494_v59, %v3475_v22 }
 0x3f1   :  { %v496_v10 = vmul.f32 0.0, %v495_v60 }
 0x3f4   :  { %v3091_v56 = vpop.eup %3090 }
 0x3f5   :  { %v589_v57 = vmul.f32 %v3091_v56, %v3471_v16 }
 0x3f7   :  { %v590_v58 = vadd.f32 %v589_v57, %v3475_v22 }
 0x3f9   :  { %596 = vrot.lane.b32.xlu0 %v590_v58, %s3340_s0  ;;  %v594_v3 = vmul.f32 %v592_v2, %v590_v58 }
 0x3fd   :  { %498 = vrot.lane.b32.xlu0 %v495_v60, %s3340_s0 }
 0x46b   :  { %v597_v61 = vpop.permute.xlu0 %596 }
 0x46c   :  { %v599_v62 = vmul.f32 %v597_v61, %v590_v58 }
 0x46e   :  { %601 = vrot.lane.b32.xlu1 %v599_v62, %s3341_s14 }
 0x46f   :  { %v499_v63 = vpop.permute.xlu0 %498 }
 0x470   :  { %v501_v1 = vmul.f32 %v499_v63, %v495_v60 }
 0x472   :  { %503 = vrot.lane.b32.xlu1 %v501_v1, %s3341_s14 }
 0x4e0   :  { %v602_v8 = vpop.permute.xlu1 %601 }
 0x4e1   :  { %v3566_v9 = vadd.f32 %v602_v8, %v594_v3 }
 0x4e3   :  { %3092 = vtanh.f32 %v3566_v9 }
 0x4e4   :  { %v504_v11 = vpop.permute.xlu1 %503 }
 0x4e5   :  { %v3569_v13 = vadd.f32 %v504_v11, %v496_v10 }
 0x4e7   :  { %3094 = vtanh.f32 %v3569_v13 }
 0x4f0   :  { %v3093_v15 = vpop.eup %3092 }
 0x4f1   :  { %607 = vrot.lane.b32.xlu0 %v3093_v15, %s3340_s0 }
 0x4f4   :  { %v3095_v17 = vpop.eup %3094 }
 0x4f5   :  { %509 = vrot.lane.b32.xlu0 %v3095_v17, %s3340_s0 }
 0x563   :  { %v608_v18 = vpop.permute.xlu0 %607 }
 0x564   :  { %v610_v19 = vmul.f32 %v608_v18, %v590_v58 }
 0x566   :  { %v612_v20 = vrot.slane %v610_v19, 2 }
 0x567   :  { %v510_v21 = vpop.permute.xlu0 %509 }
 0x568   :  { %613 = vrot.lane.b32.xlu1 %v612_v20, %s3341_s14  ;;  %v512_v23 = vmul.f32 %v510_v21, %v495_v60  ;;  %v863_v60 = vrot.slane %v3566_v9, 6 }
 0x56c   :  { %688 = vrot.lane.b32.xlu1 %v512_v23, %s3341_s14 }
 0x5da   :  { %v614_v24 = vpop.permute.xlu1 %613 }
 0x5db   :  { %2828 = vmatmul.mubr.msk.f32.vlgmr.msra.gmra.mxu1 %vm250_vm6, %v614_v24 }
 0x5dc   :  { %2842 = vmatpush3.msra.mxu1 %v3445_v4  ;;  %2849 = vmatprep.mubr.msk.f32.mxu1 %vm3338_vm0, %v3337_v0 }
 0x5dd   :  { %2843 = vmatprep.subr.mxu1 %v3337_v0 }
 0x5de   :  { %2844 = vmatpush3.msra.mxu1 %v3448_v5  ;;  %v689_v25 = vpop.permute.xlu1 %688 }
 0x5df   :  { %2845 = vmatprep.subr.mxu1 %v3337_v0  ;;  %2839 = vmatmul.mubr.msk.f32.vlgmr.msra.gmra.mxu0 %vm250_vm6, %v689_v25 }
 0x5e0   :  { %2846 = vmatpush3.msra.mxu1 %v3454_v6  ;;  %2853 = vmatpush3.msra.mxu0 %v3484_v30 }
 0x5e1   :  { %2847 = vmatprep.subr.mxu1 %v3337_v0  ;;  %2854 = vmatprep.subr.mxu0 %v3337_v0 }
 0x5e2   :  { %2848 = vmatpush3.msra.mxu1 %v3458_v7  ;;  %2855 = vmatpush3.msra.mxu0 %v3486_v31 }
 0x5e3   :  { %2850 = vmatmul.mubr.msk.f32.vlgmr.msra.gmra.mxu1 %vm250_vm6, %v614_v24  ;;  %2863 = vmatprep.subr.mxu1 %v3337_v0 }
 0x5e4   :  { %2864 = vmatpush3.msra.mxu1 %v3488_v32  ;;  %2871 = vmatprep.mubr.msk.f32.mxu1 %vm3338_vm0, %v3337_v0 }
 0x5e5   :  { %2865 = vmatprep.subr.mxu1 %v3337_v0  ;;  %2856 = vmatprep.subr.mxu0 %v3337_v0 }
 0x5e6   :  { %2866 = vmatpush3.msra.mxu1 %v3492_v33  ;;  %2857 = vmatpush3.msra.mxu0 %v3495_v34 }
 0x5e7   :  { %2867 = vmatprep.subr.mxu1 %v3337_v0  ;;  %2858 = vmatprep.subr.mxu0 %v3337_v0 }
 0x5e8   :  { %2868 = vmatpush3.msra.mxu1 %v3498_v35  ;;  %2859 = vmatpush3.msra.mxu0 %v3503_v36 }
 0x5e9   :  { %2869 = vmatprep.subr.mxu1 %v3337_v0  ;;  %2860 = vmatprep.mubr.msk.f32.mxu0 %vm3338_vm0, %v3337_v0 }
 0x5ea   :  { %2870 = vmatpush3.msra.mxu1 %v3513_v38  ;;  %2874 = vmatprep.subr.mxu0 %v3337_v0 }
 0x5eb   :  { %2885 = vmatprep.subr.mxu1 %v3337_v0 }
 0x69b   :  { %v683_v26 = vpop.f32.mrf.mxu1 }
 0x69c   :  { %v684_v28 = vadd.f32 %v3551_v44, %v683_v26 }
 0x69d   :  { %v2829_v27 = vpop.f32.mrf.mxu1 }
 0x69f   :  { %v758_v29 = vpop.f32.mrf.mxu0 }
 0x6a0   :  { %v762_v37 = vadd.f32 %v758_v29, %v684_v28 }
 0x6a1   :  { %v2840_v39 = vpop.f32.mrf.mxu0 }
 0x6a2   :  { %v763_v40 = vmul.f32 %v762_v37, %v3471_v16 }
 0x6a3   :  { %v850_v41 = vpop.f32.mrf.mxu1 }
 0x6a4   :  { %3096 = vtanh.f32 %v763_v40  ;;  %v855_v42 = vrot.slane %v850_v41, 4 }
 0x6a5   :  { %v2851_v43 = vpop.f32.mrf.mxu1 }
 0x6a6   :  { %v857_v45 = vadd.f32 %v855_v42, %v3469_v14 }
 0x6a8   :  { %v858_v46 = vmul.f32 %v857_v45, %v3471_v16 }
 0x6aa   :  { %3098 = vtanh.f32 %v858_v46 }
 0x6b1   :  { %v3097_v47 = vpop.eup %3096 }
 0x6b2   :  { %v765_v48 = vmul.f32 %v3097_v47, %v3471_v16 }
 0x6b4   :  { %v766_v49 = vadd.f32 %v765_v48, %v3475_v22 }
 0x6b6   :  { %769 = vrot.lane.b32.xlu1 %v766_v49, %s3340_s0  ;;  %v767_v57 = vmul.f32 %v766_v49, %v3569_v13 }
 0x6b7   :  { %v3099_v50 = vpop.eup %3098 }
 0x6b8   :  { %v860_v51 = vmul.f32 %v3099_v50, %v3471_v16 }
 0x6ba   :  { %v861_v52 = vadd.f32 %v860_v51, %v3475_v22 }
 0x6bc   :  { %867 = vrot.lane.b32.xlu0 %v861_v52, %s3340_s0  ;;  %v865_v61 = vmul.f32 %v863_v60, %v861_v52 }
 0x728   :  { %v770_v53 = vpop.permute.xlu1 %769 }
 0x729   :  { %v772_v54 = vmul.f32 %v770_v53, %v766_v49 }
 0x72b   :  { %774 = vrot.lane.b32.xlu1 %v772_v54, %s3341_s14 }
 0x72e   :  { %v868_v55 = vpop.permute.xlu0 %867 }
 0x72f   :  { %v870_v56 = vmul.f32 %v868_v55, %v861_v52 }
 0x731   :  { %872 = vrot.lane.b32.xlu0 %v870_v56, %s3341_s14 }
 0x79d   :  { %v775_v58 = vpop.permute.xlu1 %774 }
 0x79e   :  { %v3622_v59 = vadd.f32 %v775_v58, %v767_v57 }
 0x7a0   :  { %3100 = vtanh.f32 %v3622_v59 }
 0x7a3   :  { %v873_v62 = vpop.permute.xlu0 %872 }
 0x7a4   :  { %v3626_v63 = vadd.f32 %v873_v62, %v865_v61 }
 0x7a6   :  { %3102 = vtanh.f32 %v3626_v63  ;;  %v1134_v51 = vrot.slane %v3626_v63, 6 }
 0x7ad   :  { %v3101_v1 = vpop.eup %3100 }
 0x7ae   :  { %780 = vrot.lane.b32.xlu1 %v3101_v1, %s3340_s0 }
 0x7b3   :  { %v3103_v2 = vpop.eup %3102 }
 0x7b4   :  { %878 = vrot.lane.b32.xlu0 %v3103_v2, %s3340_s0 }
 0x820   :  { %v781_v3 = vpop.permute.xlu1 %780 }
 0x821   :  { %v783_v8 = vmul.f32 %v781_v3, %v766_v49 }
 0x823   :  { %959 = vrot.lane.b32.xlu1 %v783_v8, %s3341_s14 }
 0x826   :  { %v879_v10 = vpop.permute.xlu0 %878 }
 0x827   :  { %v881_v9 = vmul.f32 %v879_v10, %v861_v52 }
 0x829   :  { %v883_v11 = vrot.slane %v881_v9, 4 }
 0x82b   :  { %884 = vrot.lane.b32.xlu0 %v883_v11, %s3341_s14 }
 0x895   :  { %v960_v13 = vpop.permute.xlu1 %959 }
 0x896   :  { %2872 = vmatmul.mubr.msk.f32.vlgmr.msra.gmra.mxu1 %vm250_vm6, %v960_v13 }
 0x897   :  { %2886 = vmatpush3.msra.mxu1 %v3484_v30  ;;  %2893 = vmatprep.mubr.msk.f32.mxu1 %vm3338_vm0, %v3337_v0 }
 0x898   :  { %2887 = vmatprep.subr.mxu1 %v3337_v0 }
 0x899   :  { %2888 = vmatpush3.msra.mxu1 %v3486_v31 }
 0x89a   :  { %2889 = vmatprep.subr.mxu1 %v3337_v0 }
 0x89b   :  { %2890 = vmatpush3.msra.mxu1 %v3495_v34 }
 0x89c   :  { %2891 = vmatprep.subr.mxu1 %v3337_v0 }
 0x89d   :  { %v885_v15 = vpop.permute.xlu0 %884  ;;  %2892 = vmatpush3.msra.mxu1 %v3503_v36 }
 0x89e   :  { %2861 = vmatmul.mubr.msk.f32.vlgmr.msra.gmra.mxu0 %vm250_vm6, %v885_v15  ;;  %2907 = vmatprep.subr.mxu1 %v3337_v0 }
 0x89f   :  { %2875 = vmatpush3.msra.mxu0 %v3445_v4  ;;  %2882 = vmatprep.mubr.msk.f32.mxu0 %vm3338_vm0, %v3337_v0 }
 0x8a0   :  { %2876 = vmatprep.subr.mxu0 %v3337_v0 }
 0x8a1   :  { %2877 = vmatpush3.msra.mxu0 %v3448_v5 }
 0x8a2   :  { %2878 = vmatprep.subr.mxu0 %v3337_v0 }
 0x8a3   :  { %2879 = vmatpush3.msra.mxu0 %v3454_v6 }
 0x8a4   :  { %2880 = vmatprep.subr.mxu0 %v3337_v0 }
 0x8a5   :  { %2881 = vmatpush3.msra.mxu0 %v3458_v7 }
 0x8a6   :  { %2883 = vmatmul.mubr.msk.f32.vlgmr.msra.gmra.mxu0 %vm250_vm6, %v885_v15  ;;  %2896 = vmatprep.subr.mxu0 %v3337_v0 }
 0x8a7   :  { %2897 = vmatpush3.msra.mxu0 %v3488_v32  ;;  %2904 = vmatprep.mubr.msk.f32.mxu0 %vm3338_vm0, %v3337_v0 }
 0x8a8   :  { %2898 = vmatprep.subr.mxu0 %v3337_v0 }
 0x8a9   :  { %2899 = vmatpush3.msra.mxu0 %v3492_v33 }
 0x8aa   :  { %2900 = vmatprep.subr.mxu0 %v3337_v0 }
 0x8ab   :  { %2901 = vmatpush3.msra.mxu0 %v3498_v35 }
 0x8ac   :  { %2902 = vmatprep.subr.mxu0 %v3337_v0 }
 0x8ad   :  { %2903 = vmatpush3.msra.mxu0 %v3513_v38 }
 0x8ae   :  { %2918 = vmatprep.subr.mxu0 %v3337_v0 }
 0x956   :  { %v1029_v17 = vpop.f32.mrf.mxu1 }
 0x958   :  { %v2873_v18 = vpop.f32.mrf.mxu1 }
 0x95e   :  { %v954_v19 = vpop.f32.mrf.mxu0 }
 0x95f   :  { %v955_v20 = vadd.f32 %v3551_v44, %v954_v19 }
 0x960   :  { %v2862_v21 = vpop.f32.mrf.mxu0 }
 0x961   :  { %v1033_v23 = vadd.f32 %v1029_v17, %v955_v20 }
 0x963   :  { %v1034_v24 = vmul.f32 %v1033_v23, %v3471_v16 }
 0x965   :  { %3104 = vtanh.f32 %v1034_v24 }
 0x966   :  { %v1121_v25 = vpop.f32.mrf.mxu0 }
 0x967   :  { %v1126_v26 = vrot.slane %v1121_v25, 2 }
 0x968   :  { %v2884_v27 = vpop.f32.mrf.mxu0 }
 0x969   :  { %v1128_v28 = vadd.f32 %v1126_v26, %v3469_v14 }
 0x96b   :  { %v1129_v29 = vmul.f32 %v1128_v28, %v3471_v16 }
 0x96d   :  { %3106 = vtanh.f32 %v1129_v29 }
 0x972   :  { %v3105_v37 = vpop.eup %3104 }
 0x973   :  { %v1036_v39 = vmul.f32 %v3105_v37, %v3471_v16 }
 0x975   :  { %v1037_v40 = vadd.f32 %v1036_v39, %v3475_v22 }
 0x977   :  { %1040 = vrot.lane.b32.xlu1 %v1037_v40, %s3340_s0  ;;  %v1038_v48 = vmul.f32 %v1037_v40, %v3622_v59 }
 0x97a   :  { %v3107_v41 = vpop.eup %3106 }
 0x97b   :  { %v1131_v42 = vmul.f32 %v3107_v41, %v3471_v16 }
 0x97d   :  { %v1132_v43 = vadd.f32 %v1131_v42, %v3475_v22 }
 0x97f   :  { %1138 = vrot.lane.b32.xlu0 %v1132_v43, %s3340_s0  ;;  %v1136_v52 = vmul.f32 %v1134_v51, %v1132_v43 }
 0x9e9   :  { %v1041_v45 = vpop.permute.xlu1 %1040 }
 0x9ea   :  { %v1043_v46 = vmul.f32 %v1041_v45, %v1037_v40 }
 0x9ec   :  { %1045 = vrot.lane.b32.xlu1 %v1043_v46, %s3341_s14 }
 0x9f1   :  { %v1139_v14 = vpop.permute.xlu0 %1138 }
 0x9f2   :  { %v1141_v47 = vmul.f32 %v1139_v14, %v1132_v43 }
 0x9f4   :  { %1143 = vrot.lane.b32.xlu0 %v1141_v47, %s3341_s14 }
 0xa5e   :  { %v1046_v49 = vpop.permute.xlu1 %1045 }
 0xa5f   :  { %v3679_v50 = vadd.f32 %v1046_v49, %v1038_v48 }
 0xa61   :  { %3108 = vtanh.f32 %v3679_v50 }
 0xa66   :  { %v1144_v53 = vpop.permute.xlu0 %1143 }
 0xa67   :  { %v3683_v54 = vadd.f32 %v1144_v53, %v1136_v52 }
 0xa69   :  { %3110 = vtanh.f32 %v3683_v54  ;;  %v1402_v41 = vrot.slane %v3683_v54, 6 }
 0xa6e   :  { %v3109_v55 = vpop.eup %3108 }
 0xa6f   :  { %1051 = vrot.lane.b32.xlu1 %v3109_v55, %s3340_s0 }
 0xa76   :  { %v3111_v56 = vpop.eup %3110 }
 0xa77   :  { %1149 = vrot.lane.b32.xlu0 %v3111_v56, %s3340_s0 }
 0xae1   :  { %v1052_v57 = vpop.permute.xlu1 %1051 }
 0xae2   :  { %v1054_v58 = vmul.f32 %v1052_v57, %v1037_v40 }
 0xae4   :  { %1230 = vrot.lane.b32.xlu1 %v1054_v58, %s3341_s14 }
 0xae9   :  { %v1150_v59 = vpop.permute.xlu0 %1149 }
 0xaea   :  { %v1152_v60 = vmul.f32 %v1150_v59, %v1132_v43 }
 0xaec   :  { %v1154_v61 = vrot.slane %v1152_v60, 6 }
 0xaee   :  { %1155 = vrot.lane.b32.xlu0 %v1154_v61, %s3341_s14 }
 0xb56   :  { %v1231_v62 = vpop.permute.xlu1 %1230 }
 0xb57   :  { %2905 = vmatmul.mubr.msk.f32.vlgmr.msra.gmra.mxu0 %vm250_vm6, %v1231_v62 }
 0xb58   :  { %2919 = vmatpush3.msra.mxu0 %v3484_v30  ;;  %2926 = vmatprep.mubr.msk.f32.mxu0 %vm3338_vm0, %v3337_v0 }
 0xb59   :  { %2920 = vmatprep.subr.mxu0 %v3337_v0 }
 0xb5a   :  { %2921 = vmatpush3.msra.mxu0 %v3486_v31 }
 0xb5b   :  { %2922 = vmatprep.subr.mxu0 %v3337_v0 }
 0xb5c   :  { %2923 = vmatpush3.msra.mxu0 %v3495_v34 }
 0xb5d   :  { %2924 = vmatprep.subr.mxu0 %v3337_v0 }
 0xb5e   :  { %2925 = vmatpush3.msra.mxu0 %v3503_v36 }
 0xb5f   :  { %2940 = vmatprep.subr.mxu0 %v3337_v0 }
 0xb60   :  { %v1156_v63 = vpop.permute.xlu0 %1155 }
 0xb61   :  { %2894 = vmatmul.mubr.msk.f32.vlgmr.msra.gmra.mxu1 %vm250_vm6, %v1156_v63 }
 0xb62   :  { %2908 = vmatpush3.msra.mxu1 %v3445_v4  ;;  %2915 = vmatprep.mubr.msk.f32.mxu1 %vm3338_vm0, %v3337_v0 }
 0xb63   :  { %2909 = vmatprep.subr.mxu1 %v3337_v0 }
 0xb64   :  { %2910 = vmatpush3.msra.mxu1 %v3448_v5 }
 0xb65   :  { %2911 = vmatprep.subr.mxu1 %v3337_v0 }
 0xb66   :  { %2912 = vmatpush3.msra.mxu1 %v3454_v6 }
 0xb67   :  { %2913 = vmatprep.subr.mxu1 %v3337_v0 }
 0xb68   :  { %2914 = vmatpush3.msra.mxu1 %v3458_v7 }
 0xb69   :  { %2916 = vmatmul.mubr.msk.f32.vlgmr.msra.gmra.mxu1 %vm250_vm6, %v1156_v63  ;;  %2929 = vmatprep.subr.mxu1 %v3337_v0 }
 0xb6a   :  { %2930 = vmatpush3.msra.mxu1 %v3488_v32  ;;  %2937 = vmatprep.mubr.msk.f32.mxu1 %vm3338_vm0, %v3337_v0 }
 0xb6b   :  { %2931 = vmatprep.subr.mxu1 %v3337_v0 }
 0xb6c   :  { %2932 = vmatpush3.msra.mxu1 %v3492_v33 }
 0xb6d   :  { %2933 = vmatprep.subr.mxu1 %v3337_v0 }
 0xb6e   :  { %2934 = vmatpush3.msra.mxu1 %v3498_v35 }
 0xb6f   :  { %2935 = vmatprep.subr.mxu1 %v3337_v0 }
 0xb70   :  { %2936 = vmatpush3.msra.mxu1 %v3513_v38 }
 0xb71   :  { %2951 = vmatprep.subr.mxu1 %v3337_v0 }
 0xc17   :  { %v1300_v1 = vpop.f32.mrf.mxu0 }
 0xc19   :  { %v2906_v2 = vpop.f32.mrf.mxu0 }
 0xc21   :  { %v1225_v3 = vpop.f32.mrf.mxu1 }
 0xc22   :  { %v1226_v8 = vadd.f32 %v3551_v44, %v1225_v3 }
 0xc23   :  { %v2895_v10 = vpop.f32.mrf.mxu1 }
 0xc24   :  { %v1304_v9 = vadd.f32 %v1300_v1, %v1226_v8 }
 0xc26   :  { %v1305_v11 = vmul.f32 %v1304_v9, %v3471_v16 }
 0xc28   :  { %3112 = vtanh.f32 %v1305_v11 }
 0xc29   :  { %v1392_v13 = vpop.f32.mrf.mxu1 }
 0xc2a   :  { %v1396_v15 = vadd.f32 %v1392_v13, %v3467_v12 }
 0xc2b   :  { %v2917_v17 = vpop.f32.mrf.mxu1 }
 0xc2c   :  { %v1397_v18 = vmul.f32 %v1396_v15, %v3471_v16 }
 0xc2e   :  { %3114 = vtanh.f32 %v1397_v18 }
 0xc35   :  { %v3113_v19 = vpop.eup %3112 }
 0xc36   :  { %v1307_v20 = vmul.f32 %v3113_v19, %v3471_v16 }
 0xc38   :  { %v1308_v21 = vadd.f32 %v1307_v20, %v3475_v22 }
 0xc3a   :  { %1311 = vrot.lane.b32.xlu1 %v1308_v21, %s3340_s0  ;;  %v1309_v37 = vmul.f32 %v1308_v21, %v3679_v50 }
 0xc3b   :  { %v3115_v23 = vpop.eup %3114 }
 0xc3c   :  { %v1399_v24 = vmul.f32 %v3115_v23, %v3471_v16 }
 0xc3e   :  { %v1400_v25 = vadd.f32 %v1399_v24, %v3475_v22 }
 0xc40   :  { %1406 = vrot.lane.b32.xlu0 %v1400_v25, %s3340_s0  ;;  %v1404_v42 = vmul.f32 %v1402_v41, %v1400_v25 }
 0xcac   :  { %v1312_v26 = vpop.permute.xlu1 %1311 }
 0xcad   :  { %v1314_v27 = vmul.f32 %v1312_v26, %v1308_v21 }
 0xcaf   :  { %1316 = vrot.lane.b32.xlu1 %v1314_v27, %s3341_s14 }
 0xcb2   :  { %v1407_v28 = vpop.permute.xlu0 %1406 }
 0xcb3   :  { %v1409_v29 = vmul.f32 %v1407_v28, %v1400_v25 }
 0xcb5   :  { %1411 = vrot.lane.b32.xlu0 %v1409_v29, %s3341_s14 }
 0xd21   :  { %v1317_v39 = vpop.permute.xlu1 %1316 }
 0xd22   :  { %v3736_v40 = vadd.f32 %v1317_v39, %v1309_v37 }
 0xd24   :  { %3116 = vtanh.f32 %v3736_v40 }
 0xd27   :  { %v1412_v43 = vpop.permute.xlu0 %1411 }
 0xd28   :  { %v3740_v45 = vadd.f32 %v1412_v43, %v1404_v42 }
 0xd2a   :  { %3118 = vtanh.f32 %v3740_v45  ;;  %v1672_v23 = vrot.slane %v3740_v45, 6 }
 0xd31   :  { %v3117_v46 = vpop.eup %3116 }
 0xd32   :  { %1322 = vrot.lane.b32.xlu1 %v3117_v46, %s3340_s0 }
 0xd37   :  { %v3119_v14 = vpop.eup %3118 }
 0xd38   :  { %1417 = vrot.lane.b32.xlu0 %v3119_v14, %s3340_s0 }
 0xda4   :  { %v1323_v47 = vpop.permute.xlu1 %1322 }
 0xda5   :  { %v1325_v48 = vmul.f32 %v1323_v47, %v1308_v21 }
 0xda7   :  { %1497 = vrot.lane.b32.xlu1 %v1325_v48, %s3341_s14 }
 0xdaa   :  { %v1418_v49 = vpop.permute.xlu0 %1417 }
 0xdab   :  { %v1420_v50 = vmul.f32 %v1418_v49, %v1400_v25 }
 0xdad   :  { %1422 = vrot.lane.b32.xlu0 %v1420_v50, %s3341_s14 }
 0xe19   :  { %v1498_v51 = vpop.permute.xlu1 %1497 }
 0xe1a   :  { %2938 = vmatmul.mubr.msk.f32.vlgmr.msra.gmra.mxu1 %vm250_vm6, %v1498_v51 }
 0xe1b   :  { %2952 = vmatpush3.msra.mxu1 %v3484_v30  ;;  %2959 = vmatprep.mubr.msk.f32.mxu1 %vm3338_vm0, %v3337_v0 }
 0xe1c   :  { %2953 = vmatprep.subr.mxu1 %v3337_v0 }
 0xe1d   :  { %2954 = vmatpush3.msra.mxu1 %v3486_v31 }
 0xe1e   :  { %2955 = vmatprep.subr.mxu1 %v3337_v0 }
 0xe1f   :  { %v1423_v52 = vpop.permute.xlu0 %1422  ;;  %2956 = vmatpush3.msra.mxu1 %v3495_v34 }
 0xe20   :  { %2927 = vmatmul.mubr.msk.f32.vlgmr.msra.gmra.mxu0 %vm250_vm6, %v1423_v52  ;;  %2957 = vmatprep.subr.mxu1 %v3337_v0 }
 0xe21   :  { %2941 = vmatpush3.msra.mxu0 %v3445_v4  ;;  %2948 = vmatprep.mubr.msk.f32.mxu0 %vm3338_vm0, %v3337_v0 }
 0xe22   :  { %2942 = vmatprep.subr.mxu0 %v3337_v0  ;;  %2958 = vmatpush3.msra.mxu1 %v3503_v36 }
 0xe23   :  { %2943 = vmatpush3.msra.mxu0 %v3448_v5  ;;  %2973 = vmatprep.subr.mxu1 %v3337_v0 }
 0xe24   :  { %2944 = vmatprep.subr.mxu0 %v3337_v0 }
 0xe25   :  { %2945 = vmatpush3.msra.mxu0 %v3454_v6 }
 0xe26   :  { %2946 = vmatprep.subr.mxu0 %v3337_v0 }
 0xe27   :  { %2947 = vmatpush3.msra.mxu0 %v3458_v7 }
 0xe28   :  { %2949 = vmatmul.mubr.msk.f32.vlgmr.msra.gmra.mxu0 %vm250_vm6, %v1423_v52  ;;  %2962 = vmatprep.subr.mxu0 %v3337_v0 }
 0xe29   :  { %2963 = vmatpush3.msra.mxu0 %v3488_v32  ;;  %2970 = vmatprep.mubr.msk.f32.mxu0 %vm3338_vm0, %v3337_v0 }
 0xe2a   :  { %2964 = vmatprep.subr.mxu0 %v3337_v0 }
 0xe2b   :  { %2965 = vmatpush3.msra.mxu0 %v3492_v33 }
 0xe2c   :  { %2966 = vmatprep.subr.mxu0 %v3337_v0 }
 0xe2d   :  { %2967 = vmatpush3.msra.mxu0 %v3498_v35 }
 0xe2e   :  { %2968 = vmatprep.subr.mxu0 %v3337_v0 }
 0xe2f   :  { %2969 = vmatpush3.msra.mxu0 %v3513_v38 }
 0xe30   :  { %2984 = vmatprep.subr.mxu0 %v3337_v0 }
 0xeda   :  { %v1567_v53 = vpop.f32.mrf.mxu1 }
 0xedc   :  { %v2939_v54 = vpop.f32.mrf.mxu1 }
 0xee0   :  { %v1492_v55 = vpop.f32.mrf.mxu0 }
 0xee1   :  { %v1493_v56 = vadd.f32 %v3551_v44, %v1492_v55 }
 0xee2   :  { %v2928_v57 = vpop.f32.mrf.mxu0 }
 0xee3   :  { %v1571_v58 = vadd.f32 %v1567_v53, %v1493_v56 }
 0xee5   :  { %v1572_v59 = vmul.f32 %v1571_v58, %v3471_v16 }
 0xee7   :  { %3120 = vtanh.f32 %v1572_v59 }
 0xee8   :  { %v1659_v60 = vpop.f32.mrf.mxu0 }
 0xee9   :  { %v1664_v61 = vrot.slane %v1659_v60, 6 }
 0xeea   :  { %v2950_v62 = vpop.f32.mrf.mxu0 }
 0xeeb   :  { %v1666_v63 = vadd.f32 %v1664_v61, %v3467_v12 }
 0xeed   :  { %v1667_v1 = vmul.f32 %v1666_v63, %v3471_v16 }
 0xeef   :  { %3122 = vtanh.f32 %v1667_v1 }
 0xef4   :  { %v3121_v2 = vpop.eup %3120 }
 0xef5   :  { %v1574_v3 = vmul.f32 %v3121_v2, %v3471_v16 }
 0xef7   :  { %v1575_v8 = vadd.f32 %v1574_v3, %v3475_v22 }
 0xef9   :  { %1578 = vrot.lane.b32.xlu1 %v1575_v8, %s3340_s0  ;;  %v1576_v19 = vmul.f32 %v1575_v8, %v3736_v40 }
 0xefc   :  { %v3123_v10 = vpop.eup %3122 }
 0xefd   :  { %v1669_v9 = vmul.f32 %v3123_v10, %v3471_v16 }
 0xeff   :  { %v1670_v11 = vadd.f32 %v1669_v9, %v3475_v22 }
 0xf01   :  { %1676 = vrot.lane.b32.xlu0 %v1670_v11, %s3340_s0  ;;  %v1674_v24 = vmul.f32 %v1672_v23, %v1670_v11  ;;  %v3156_v23 = vld [vmem:[#allocation10] sm:$0xff] }
 0xf6b   :  { %v1579_v13 = vpop.permute.xlu1 %1578 }
 0xf6c   :  { %v1581_v15 = vmul.f32 %v1579_v13, %v1575_v8 }
 0xf6e   :  { %1583 = vrot.lane.b32.xlu1 %v1581_v15, %s3341_s14  ;;  %v3148_v15 = vld [vmem:[#allocation8 + $0x10] sm:$0xff] }
 0xf73   :  { %v1677_v17 = vpop.permute.xlu0 %1676 }
 0xf74   :  { %v1679_v18 = vmul.f32 %v1677_v17, %v1670_v11 }
 0xf76   :  { %1681 = vrot.lane.b32.xlu0 %v1679_v18, %s3341_s14  ;;  %v3150_v18 = vld [vmem:[#allocation5 + $0x10] sm:$0xff] }
 0xfe0   :  { %v1584_v20 = vpop.permute.xlu1 %1583 }
 0xfe1   :  { %v3793_v21 = vadd.f32 %v1584_v20, %v1576_v19  ;;  %v3153_v19 = vld [vmem:[#allocation10 + $0x18] sm:$0xff]  ;;  %v3154_v20 = vld [vmem:[#allocation10 + $0x10] sm:$0xff] }
 0xfe3   :  { %3124 = vtanh.f32 %v3793_v21 }
 0xfe8   :  { %v1682_v25 = vpop.permute.xlu0 %1681 }
 0xfe9   :  { %v3797_v26 = vadd.f32 %v1682_v25, %v1674_v24 }
 0xfeb   :  { %3126 = vtanh.f32 %v3797_v26  ;;  %v1943_v60 = vrot.slane %v3797_v26, 6 }
 0xff0   :  { %v3125_v27 = vpop.eup %3124 }
 0xff1   :  { %1589 = vrot.lane.b32.xlu1 %v3125_v27, %s3340_s0 }
 0xff8   :  { %v3127_v28 = vpop.eup %3126 }
 0xff9   :  { %1687 = vrot.lane.b32.xlu0 %v3127_v28, %s3340_s0 }
0x1063   :  { %v1590_v29 = vpop.permute.xlu1 %1589 }
0x1064   :  { %v1592_v37 = vmul.f32 %v1590_v29, %v1575_v8 }
0x1066   :  { %1768 = vrot.lane.b32.xlu1 %v1592_v37, %s3341_s14 }
0x106b   :  { %v1688_v39 = vpop.permute.xlu0 %1687 }
0x106c   :  { %v1690_v40 = vmul.f32 %v1688_v39, %v1670_v11 }
0x106e   :  { %v1692_v41 = vrot.slane %v1690_v40, 2 }
0x1070   :  { %1693 = vrot.lane.b32.xlu0 %v1692_v41, %s3341_s14 }
0x10d8   :  { %v1769_v42 = vpop.permute.xlu1 %1768 }
0x10d9   :  { %2971 = vmatmul.mubr.msk.f32.vlgmr.msra.gmra.mxu0 %vm250_vm6, %v1769_v42 }
0x10da   :  { %2985 = vmatpush3.msra.mxu0 %v3484_v30  ;;  %2992 = vmatprep.mubr.msk.f32.mxu0 %vm3338_vm0, %v3337_v0 }
0x10db   :  { %2986 = vmatprep.subr.mxu0 %v3337_v0 }
0x10dc   :  { %2987 = vmatpush3.msra.mxu0 %v3486_v31 }
0x10dd   :  { %2988 = vmatprep.subr.mxu0 %v3337_v0 }
0x10de   :  { %2989 = vmatpush3.msra.mxu0 %v3495_v34 }
0x10df   :  { %2990 = vmatprep.subr.mxu0 %v3337_v0 }
0x10e0   :  { %2991 = vmatpush3.msra.mxu0 %v3503_v36 }
0x10e1   :  { %3006 = vmatprep.subr.mxu0 %v3337_v0 }
0x10e2   :  { %v1694_v43 = vpop.permute.xlu0 %1693 }
0x10e3   :  { %2960 = vmatmul.mubr.msk.f32.vlgmr.msra.gmra.mxu1 %vm250_vm6, %v1694_v43 }
0x10e4   :  { %2974 = vmatpush3.msra.mxu1 %v3445_v4  ;;  %2981 = vmatprep.mubr.msk.f32.mxu1 %vm3338_vm0, %v3337_v0 }
0x10e5   :  { %2975 = vmatprep.subr.mxu1 %v3337_v0 }
0x10e6   :  { %2976 = vmatpush3.msra.mxu1 %v3448_v5 }
0x10e7   :  { %2977 = vmatprep.subr.mxu1 %v3337_v0 }
0x10e8   :  { %2978 = vmatpush3.msra.mxu1 %v3454_v6 }
0x10e9   :  { %2979 = vmatprep.subr.mxu1 %v3337_v0 }
0x10ea   :  { %2980 = vmatpush3.msra.mxu1 %v3458_v7 }
0x10eb   :  { %2982 = vmatmul.mubr.msk.f32.vlgmr.msra.gmra.mxu1 %vm250_vm6, %v1694_v43  ;;  %2995 = vmatprep.subr.mxu1 %v3337_v0 }
0x10ec   :  { %2996 = vmatpush3.msra.mxu1 %v3488_v32  ;;  %3003 = vmatprep.mubr.msk.f32.mxu1 %vm3338_vm0, %v3337_v0 }
0x10ed   :  { %2997 = vmatprep.subr.mxu1 %v3337_v0 }
0x10ee   :  { %2998 = vmatpush3.msra.mxu1 %v3492_v33 }
0x10ef   :  { %2999 = vmatprep.subr.mxu1 %v3337_v0 }
0x10f0   :  { %3000 = vmatpush3.msra.mxu1 %v3498_v35 }
0x10f1   :  { %3001 = vmatprep.subr.mxu1 %v3337_v0 }
0x10f2   :  { %3002 = vmatpush3.msra.mxu1 %v3513_v38 }
0x10f3   :  { %3017 = vmatprep.subr.mxu1 %v3337_v0 }
0x1199   :  { %v1838_v4 = vpop.f32.mrf.mxu0 }
0x119b   :  { %v2972_v5 = vpop.f32.mrf.mxu0 }
0x11a3   :  { %v1763_v6 = vpop.f32.mrf.mxu1 }
0x11a4   :  { %v1764_v7 = vadd.f32 %v3551_v44, %v1763_v6 }
0x11a5   :  { %v2961_v31 = vpop.f32.mrf.mxu1 }
0x11a6   :  { %v1842_v32 = vadd.f32 %v1838_v4, %v1764_v7 }
0x11a8   :  { %v1843_v45 = vmul.f32 %v1842_v32, %v3471_v16 }
0x11aa   :  { %3128 = vtanh.f32 %v1843_v45 }
0x11ab   :  { %v1930_v33 = vpop.f32.mrf.mxu1 }
0x11ac   :  { %v1935_v46 = vrot.slane %v1930_v33, 4 }
0x11ad   :  { %v2983_v14 = vpop.f32.mrf.mxu1 }
0x11ae   :  { %v1937_v35 = vadd.f32 %v1935_v46, %v3467_v12 }
0x11b0   :  { %v1938_v47 = vmul.f32 %v1937_v35, %v3471_v16 }
0x11b2   :  { %3130 = vtanh.f32 %v1938_v47 }
0x11b7   :  { %v3129_v38 = vpop.eup %3128 }
0x11b8   :  { %v1845_v48 = vmul.f32 %v3129_v38, %v3471_v16 }
0x11ba   :  { %v1846_v49 = vadd.f32 %v1845_v48, %v3475_v22 }
0x11bc   :  { %1849 = vrot.lane.b32.xlu1 %v1846_v49, %s3340_s0  ;;  %v1847_v57 = vmul.f32 %v1846_v49, %v3793_v21  ;;  %v3155_v21 = vld [vmem:[#allocation10 + $0x8] sm:$0xff] }
0x11bf   :  { %v3131_v50 = vpop.eup %3130 }
0x11c0   :  { %v1940_v51 = vmul.f32 %v3131_v50, %v3471_v16 }
0x11c2   :  { %v1941_v52 = vadd.f32 %v1940_v51, %v3475_v22 }
0x11c4   :  { %1947 = vrot.lane.b32.xlu0 %v1941_v52, %s3340_s0  ;;  %v1945_v61 = vmul.f32 %v1943_v60, %v1941_v52 }
0x122e   :  { %v1850_v53 = vpop.permute.xlu1 %1849 }
0x122f   :  { %v1852_v54 = vmul.f32 %v1850_v53, %v1846_v49 }
0x1231   :  { %1854 = vrot.lane.b32.xlu1 %v1852_v54, %s3341_s14 }
0x1236   :  { %v1948_v55 = vpop.permute.xlu0 %1947 }
0x1237   :  { %v1950_v56 = vmul.f32 %v1948_v55, %v1941_v52 }
0x1239   :  { %1952 = vrot.lane.b32.xlu0 %v1950_v56, %s3341_s14 }
0x12a3   :  { %v1855_v58 = vpop.permute.xlu1 %1854 }
0x12a4   :  { %v3850_v59 = vadd.f32 %v1855_v58, %v1847_v57 }
0x12a6   :  { %3132 = vtanh.f32 %v3850_v59 }
0x12ab   :  { %v1953_v62 = vpop.permute.xlu0 %1952 }
0x12ac   :  { %v3854_v63 = vadd.f32 %v1953_v62, %v1945_v61  ;;  %v3157_v62 = vld [vmem:[#allocation11] ss:$0 sm:$0xff] }
0x12ae   :  { %3134 = vtanh.f32 %v3854_v63  ;;  %v2214_v47 = vrot.slane %v3854_v63, 6 }
0x12b3   :  { %v3133_v1 = vpop.eup %3132 }
0x12b4   :  { %1860 = vrot.lane.b32.xlu1 %v3133_v1, %s3340_s0 }
0x12bb   :  { %v3135_v2 = vpop.eup %3134 }
0x12bc   :  { %1958 = vrot.lane.b32.xlu0 %v3135_v2, %s3340_s0 }
0x1326   :  { %v1861_v3 = vpop.permute.xlu1 %1860 }
0x1327   :  { %v1863_v8 = vmul.f32 %v1861_v3, %v1846_v49 }
0x1329   :  { %2039 = vrot.lane.b32.xlu1 %v1863_v8, %s3341_s14 }
0x132e   :  { %v1959_v10 = vpop.permute.xlu0 %1958 }
0x132f   :  { %v1961_v9 = vmul.f32 %v1959_v10, %v1941_v52 }
0x1331   :  { %v1963_v11 = vrot.slane %v1961_v9, 4 }
0x1333   :  { %1964 = vrot.lane.b32.xlu0 %v1963_v11, %s3341_s14 }
0x139b   :  { %v2040_v13 = vpop.permute.xlu1 %2039 }
0x139c   :  { %3004 = vmatmul.mubr.msk.f32.vlgmr.msra.gmra.mxu1 %vm250_vm6, %v2040_v13 }
0x139d   :  { %3018 = vmatpush3.msra.mxu1 %v3484_v30  ;;  %3025 = vmatprep.mubr.msk.f32.mxu1 %vm3338_vm0, %v3337_v0  ;;  %v3149_v30 = vld [vmem:[#allocation5 + $0x18] sm:$0xff] }
0x139e   :  { %3019 = vmatprep.subr.mxu1 %v3337_v0 }
0x139f   :  { %3020 = vmatpush3.msra.mxu1 %v3148_v15 }
0x13a0   :  { %3021 = vmatprep.subr.mxu1 %v3337_v0 }
0x13a1   :  { %3022 = vmatpush3.msra.mxu1 %v3495_v34  ;;  %v3151_v34 = vld [vmem:[#allocation5 + $0x8] sm:$0xff] }
0x13a2   :  { %3023 = vmatprep.subr.mxu1 %v3337_v0 }
0x13a3   :  { %3024 = vmatpush3.msra.mxu1 %v3503_v36  ;;  %v3152_v36 = vld [vmem:[#allocation5] sm:$0xff] }
0x13a4   :  { %3039 = vmatprep.subr.mxu1 %v3337_v0 }
0x13a5   :  { %v1965_v17 = vpop.permute.xlu0 %1964 }
0x13a6   :  { %2993 = vmatmul.mubr.msk.f32.vlgmr.msra.gmra.mxu0 %vm250_vm6, %v1965_v17 }
0x13a7   :  { %3007 = vmatpush3.msra.mxu0 %v3149_v30  ;;  %3014 = vmatprep.mubr.msk.f32.mxu0 %vm3338_vm0, %v3337_v0 }
0x13a8   :  { %3008 = vmatprep.subr.mxu0 %v3337_v0 }
0x13a9   :  { %3009 = vmatpush3.msra.mxu0 %v3150_v18  ;;  %v2410_v18 = vld [vmem:[%s3955_s7 + $0x18] sm:$0xff] }
0x13aa   :  { %3010 = vmatprep.subr.mxu0 %v3337_v0 }
0x13ab   :  { %3011 = vmatpush3.msra.mxu0 %v3151_v34  ;;  %v2407_v34 = vld [vmem:[%s3955_s7] sm:$0xff] }
0x13ac   :  { %3012 = vmatprep.subr.mxu0 %v3337_v0 }
0x13ad   :  { %3013 = vmatpush3.msra.mxu0 %v3152_v36 }
0x13ae   :  { %3015 = vmatmul.mubr.msk.f32.vlgmr.msra.gmra.mxu0 %vm250_vm6, %v1965_v17  ;;  %3028 = vmatprep.subr.mxu0 %v3337_v0 }
0x13af   :  { %3029 = vmatpush3.msra.mxu0 %v3153_v19  ;;  %3036 = vmatprep.mubr.msk.f32.mxu0 %vm3338_vm0, %v3337_v0  ;;  %v2501_v19 = vld [vmem:[#allocation13 + $0x38] sm:$0xff] }
0x13b0   :  { %3030 = vmatprep.subr.mxu0 %v3337_v0 }
0x13b1   :  { %3031 = vmatpush3.msra.mxu0 %v3154_v20  ;;  %v2500_v20 = vld [vmem:[#allocation13 + $0x30] sm:$0xff] }
0x13b2   :  { %3032 = vmatprep.subr.mxu0 %v3337_v0 }
0x13b3   :  { %3033 = vmatpush3.msra.mxu0 %v3155_v21  ;;  %v2499_v21 = vld [vmem:[#allocation13 + $0x28] sm:$0xff] }
0x13b4   :  { %3034 = vmatprep.subr.mxu0 %v3337_v0 }
0x13b5   :  { %3035 = vmatpush3.msra.mxu0 %v3156_v23  ;;  %v2498_v23 = vld [vmem:[#allocation13 + $0x20] sm:$0xff] }
0x13b6   :  { %3050 = vmatprep.subr.mxu0 %v3337_v0 }
0x145c   :  { %v2109_v24 = vpop.f32.mrf.mxu1 }
0x145e   :  { %v3005_v25 = vpop.f32.mrf.mxu1 }
0x1466   :  { %v2034_v26 = vpop.f32.mrf.mxu0 }
0x1467   :  { %v2035_v27 = vadd.f32 %v3551_v44, %v2034_v26 }
0x1468   :  { %v2994_v28 = vpop.f32.mrf.mxu0 }
0x1469   :  { %v2113_v29 = vadd.f32 %v2109_v24, %v2035_v27  ;;  %v2497_v24 = vld [vmem:[#allocation13 + $0x18] sm:$0xff] }
0x146b   :  { %v2114_v37 = vmul.f32 %v2113_v29, %v3471_v16  ;;  %v2496_v29 = vld [vmem:[#allocation13 + $0x10] sm:$0xff] }
0x146d   :  { %3136 = vtanh.f32 %v2114_v37  ;;  %v2495_v37 = vld [vmem:[#allocation13 + $0x8] sm:$0xff] }
0x146e   :  { %v2201_v39 = vpop.f32.mrf.mxu0 }
0x146f   :  { %v2206_v40 = vrot.slane %v2201_v39, 2  ;;  %v2494_v39 = vld [vmem:[#allocation13] sm:$0xff] }
0x1470   :  { %v3016_v41 = vpop.f32.mrf.mxu0 }
0x1471   :  { %v2208_v42 = vadd.f32 %v2206_v40, %v3467_v12  ;;  %v2629_v40 = vld [vmem:[%s3956_s8] ss:$0 sm:$0xff] }
0x1473   :  { %v2209_v43 = vmul.f32 %v2208_v42, %v3471_v16 }
0x1475   :  { %3138 = vtanh.f32 %v2209_v43 }
0x147a   :  { %v3137_v4 = vpop.eup %3136 }
0x147b   :  { %v2116_v5 = vmul.f32 %v3137_v4, %v3471_v16 }
0x147d   :  { %v2117_v6 = vadd.f32 %v2116_v5, %v3475_v22  ;;  %v2631_v5 = vld [vmem:[%s3958_s10] ss:$0 sm:$0xff] }
0x147f   :  { %2120 = vrot.lane.b32.xlu1 %v2117_v6, %s3340_s0  ;;  %v2118_v46 = vmul.f32 %v2117_v6, %v3850_v59 }
0x1482   :  { %v3139_v44 = vpop.eup %3138 }
0x1483   :  { %v2211_v7 = vmul.f32 %v3139_v44, %v3471_v16 }
0x1485   :  { %v2212_v31 = vadd.f32 %v2211_v7, %v3475_v22 }
0x1487   :  { %2218 = vrot.lane.b32.xlu0 %v2212_v31, %s3340_s0  ;;  %v2216_v38 = vmul.f32 %v2214_v47, %v2212_v31 }
0x14f1   :  { %v2121_v32 = vpop.permute.xlu1 %2120 }
0x14f2   :  { %v2123_v45 = vmul.f32 %v2121_v32, %v2117_v6 }
0x14f4   :  { %2125 = vrot.lane.b32.xlu1 %v2123_v45, %s3341_s14 }
0x14f9   :  { %v2219_v12 = vpop.permute.xlu0 %2218 }
0x14fa   :  { %v2221_v33 = vmul.f32 %v2219_v12, %v2212_v31 }
0x14fc   :  { %2223 = vrot.lane.b32.xlu0 %v2221_v33, %s3341_s14 }
0x1566   :  { %v2126_v14 = vpop.permute.xlu1 %2125 }
0x1567   :  { %v2128_v35 = vadd.f32 %v2126_v14, %v2118_v46 }
0x1569   :  { %3140 = vtanh.f32 %v2128_v35 }
0x156e   :  { %v2224_v48 = vpop.permute.xlu0 %2223 }
0x156f   :  { %v2226_v49 = vadd.f32 %v2224_v48, %v2216_v38 }
0x1571   :  { %3142 = vtanh.f32 %v2226_v49 }
0x1576   :  { %v3141_v50 = vpop.eup %3140 }
0x1577   :  { %2131 = vrot.lane.b32.xlu1 %v3141_v50, %s3340_s0 }
0x157e   :  { %v3143_v51 = vpop.eup %3142 }
0x157f   :  { %2229 = vrot.lane.b32.xlu0 %v3143_v51, %s3340_s0 }
0x15e9   :  { %v2132_v52 = vpop.permute.xlu1 %2131 }
0x15ea   :  { %v2134_v53 = vmul.f32 %v2132_v52, %v2117_v6 }
0x15ec   :  { %2310 = vrot.lane.b32.xlu1 %v2134_v53, %s3341_s14 }
0x15f1   :  { %v2230_v54 = vpop.permute.xlu0 %2229 }
0x15f2   :  { %v2232_v55 = vmul.f32 %v2230_v54, %v2212_v31 }
0x15f4   :  { %v2234_v56 = vrot.slane %v2232_v55, 6 }
0x15f6   :  { %2235 = vrot.lane.b32.xlu0 %v2234_v56, %s3341_s14 }
0x165e   :  { %v2311_v57 = vpop.permute.xlu1 %2310 }
0x165f   :  { %3037 = vmatmul.mubr.msk.f32.vlgmr.msra.gmra.mxu0 %vm250_vm6, %v2311_v57 }
0x1660   :  { %3066 = vmatprep.mubr.msk.f32.mxu0 %vm3338_vm0, %v3337_v0  ;;  %3051 = vmatpush3.msra.mxu0 %v2501_v19 }
0x1661   :  { %3052 = vmatprep.subr.mxu0 %v3337_v0 }
0x1662   :  { %3053 = vmatpush3.msra.mxu0 %v2500_v20 }
0x1663   :  { %3054 = vmatprep.subr.mxu0 %v3337_v0 }
0x1664   :  { %3055 = vmatpush3.msra.mxu0 %v2499_v21 }
0x1665   :  { %3056 = vmatprep.subr.mxu0 %v3337_v0 }
0x1666   :  { %3057 = vmatpush3.msra.mxu0 %v2498_v23 }
0x1667   :  { %3058 = vmatprep.subr.mxu0 %v3337_v0 }
0x1668   :  { %v2236_v58 = vpop.permute.xlu0 %2235  ;;  %3059 = vmatpush3.msra.mxu0 %v2497_v24 }
0x1669   :  { %3026 = vmatmul.mubr.msk.f32.vlgmr.msra.gmra.mxu1 %vm250_vm6, %v2236_v58  ;;  %3060 = vmatprep.subr.mxu0 %v3337_v0 }
0x166a   :  { %3047 = vmatprep.mubr.msk.f32.mxu1 %vm3338_vm0, %v3337_v0  ;;  %3040 = vmatpush3.msra.mxu1 %v2410_v18 }
0x166b   :  { %3041 = vmatprep.subr.mxu1 %v3337_v0  ;;  %3061 = vmatpush3.msra.mxu0 %v2496_v29 }
0x166c   :  { %3062 = vmatprep.subr.mxu0 %v3337_v0 }
0x166d   :  { %3063 = vmatpush3.msra.mxu0 %v2495_v37 }
0x166e   :  { %3064 = vmatprep.subr.mxu0 %v3337_v0 }
0x166f   :  { %3065 = vmatpush3.msra.mxu0 %v2494_v39 }
0x171f   :  { %v2380_v59 = vpop.f32.mrf.mxu0 }
0x1721   :  { %v3038_v60 = vpop.f32.mrf.mxu0 }
0x1729   :  { %v2305_v61 = vpop.f32.mrf.mxu1 }
0x172a   :  { %v2306_v63 = vadd.f32 %v3157_v62, %v2305_v61 }
0x172b   :  { %v3027_v1 = vpop.f32.mrf.mxu1 }
0x172c   :  { %v2384_v2 = vadd.f32 %v2380_v59, %v2306_v63 }
0x172e   :  { %v2385_v3 = vmul.f32 %v2384_v2, %v3471_v16 }
0x1730   :  { %3144 = vtanh.f32 %v2385_v3 }
0x173d   :  { %v3145_v8 = vpop.eup %3144 }
0x173e   :  { %v2387_v10 = vmul.f32 %v3145_v8, %v3471_v16  ;;  %v2409_v16 = vld [vmem:[%s3955_s7 + $0x10] sm:$0xff] }
0x173f   :  { %3042 = vmatpush3.msra.mxu1 %v2409_v16 }
0x1740   :  { %v2388_v9 = vadd.f32 %v2387_v10, %v3475_v22  ;;  %v2408_v22 = vld [vmem:[%s3955_s7 + $0x8] sm:$0xff]  ;;  %3043 = vmatprep.subr.mxu1 %v3337_v0 }
0x1741   :  { %3044 = vmatpush3.msra.mxu1 %v2408_v22 }
0x1742   :  { %2391 = vrot.lane.b32.xlu0 %v2388_v9, %s3340_s0  ;;  %v2389_v15 = vmul.f32 %v2388_v9, %v2128_v35  ;;  %3045 = vmatprep.subr.mxu1 %v3337_v0 }
0x1743   :  { %3046 = vmatpush3.msra.mxu1 %v2407_v34 }
0x17b4   :  { %v2392_v11 = vpop.permute.xlu0 %2391 }
0x17b5   :  { %v2394_v13 = vmul.f32 %v2392_v11, %v2388_v9 }
0x17b7   :  { %2396 = vrot.lane.b32.xlu1 %v2394_v13, %s3341_s14 }
0x1829   :  { %v2397_v17 = vpop.permute.xlu1 %2396 }
0x182a   :  { %v2399_v30 = vadd.f32 %v2397_v17, %v2389_v15 }
0x182c   :  { %3146 = vtanh.f32 %v2399_v30 }
0x1839   :  { %v3147_v36 = vpop.eup %3146 }
0x183a   :  { %2402 = vrot.lane.b32.xlu0 %v3147_v36, %s3340_s0 }
0x18ac   :  { %v2403_v25 = vpop.permute.xlu0 %2402 }
0x18ad   :  { %v2405_v26 = vmul.f32 %v2403_v25, %v2388_v9 }
0x18af   :  { %v2406_v27 = vmax.f32 %v2405_v26, 0.0 }
0x18b1   :  { %2419 = vrot.lane.b32.xlu1 %v2406_v27, %s3341_s14 }
0x1923   :  { %v2420_v28 = vpop.permute.xlu1 %2419 }
0x1924   :  { %3048 = vmatmul.mubr.msk.f32.vlgmr.msra.gmra.mxu1 %vm250_vm6, %v2420_v28 }
0x19e4   :  { %v2489_v41 = vpop.f32.mrf.mxu1 }
0x19e5   :  { %v2490_v42 = vadd.f32 %v2629_v40, %v2489_v41 }
0x19e6   :  { %v3049_v43 = vpop.f32.mrf.mxu1 }
0x19e7   :  { %v2493_v4 = vmax.f32 %v2490_v42, 0.0 }
0x19e9   :  { %3067 = vmatmul.mubr.msk.f32.vlgmr.msra.gmra.mxu0 %vm2509_vm7, %v2493_v4 }
0x1aa9   :  { %v2579_v6 = vpop.f32.mrf.mxu0 }
0x1aaa   :  { %v2580_v0 = vadd.f32 %v2631_v5, %v2579_v6 }
0x1aab   :  { %v3068_v44 = vpop.f32.mrf.mxu0 }
0x1aac   :  { %2583 = vst [vmem:[#allocation14] sm:$0x3] %v2580_v0 }
0x1aad   :  { %3309 = shalt.err (!%p3306_p11)
}
0x1aae   :  { %2593 = dma.vmem_to_hbm [thread:$0]  %s2591_s27, 32, %s3959_s11, [#allocation4]  }
0x1aaf   :  { %3326 = dma.done.wait [#allocation4], 32  }
0x1ab0   :  { %3327 = vsyncadd [#allocation4], 4294967264 }
0x1ab1   :  { %2597 = vsyncpa [#allocation3], 1 }
0x1ab2   :  { %2598 = vsyncpa [#allocation6], 1 }
0x1ab3   :  { %2599 = vsyncpa [#allocation9], 1 }
0x1ab4   :  { %2600 = vsyncpa [#allocation12], 1 }
0x1ab5   :  { %2601 = vsyncpa [#allocation4], 1 }

</bundles_post_ra>
